<compile_context>
chip_gen: v7x
topology: tpu7x:2x2x1
jax: 0.10.0
libtpu: 0.0.40
codegen_flags: <defaults>
</compile_context>

<pallas_src>
import jax
import jax.numpy as jnp
from jax import lax
from jax.experimental import pallas as pl
from jax.experimental.pallas import tpu as pltpu

NEG_SLOPE = 0.01  # nn.LeakyReLU default


def _leaky(v):
    # For 0 < slope < 1:  max(v, slope*v) == LeakyReLU(v)   (mul + max)
    return jnp.maximum(v, NEG_SLOPE * v)


def _round_up(x, m):
    return (x + m - 1) // m * m


def _vmem_cap_bytes():
    try:
        cap = getattr(pltpu.get_tpu_info(), "vmem_capacity_bytes", None)
        if cap:
            return int(cap)
    except Exception:
        pass
    return 64 * 1024 * 1024  # conservative default (v7x per-TC VMEM)


def _choose_tb(batch, tile_b):
    """Batch tile: multiple of 16, small enough that the grid has >= 2 steps
    (v7x dual-TC sharding) unless the whole batch fits in one tile."""
    tb = min(tile_b, _round_up(max(-(-batch // 2), 1), 16))
    if tb >= batch:
        tb = batch  # single full-extent block (always layout-legal)
    return max(tb, 1)


def subnet_kernel(x_ref,
                  w_in_ref, b_in_ref,
                  w1a_ref, b1a_ref, w1b_ref, b1b_ref,
                  w2a_ref, b2a_ref, w2b_ref, b2b_ref,
                  w_out_ref, b_out_ref,
                  o_ref):
    cdt = w_in_ref.dtype          # MXU operand dtype (bf16)
    f32 = jnp.float32

    x = x_ref[...].astype(cdt)    # cast in-kernel; no wrapper-side copy

    # linear_in + LeakyReLU
    h = jnp.dot(x, w_in_ref[...], preferred_element_type=f32) + b_in_ref[...]
    h = _leaky(h)

    # ResBlock 1: lin -> lrelu -> lin, += 0.1*x, lrelu
    t = jnp.dot(h.astype(cdt), w1a_ref[...], preferred_element_type=f32) + b1a_ref[...]
    t = _leaky(t)
    t = jnp.dot(t.astype(cdt), w1b_ref[...], preferred_element_type=f32) + b1b_ref[...]
    h = _leaky(t + 0.1 * h)

    # ResBlock 2
    t = jnp.dot(h.astype(cdt), w2a_ref[...], preferred_element_type=f32) + b2a_ref[...]
    t = _leaky(t)
    t = jnp.dot(t.astype(cdt), w2b_ref[...], preferred_element_type=f32) + b2b_ref[...]
    h = _leaky(t + 0.1 * h)

    # linear_out (no activation); output written at its true d_out width
    y = jnp.dot(h.astype(cdt), w_out_ref[...], preferred_element_type=f32) + b_out_ref[...]
    o_ref[...] = y.astype(o_ref.dtype)


def pack_params(params, compute_dtype=jnp.bfloat16):
    """One-time layout pass: pad hidden dims to a lane-dense multiple of 128
    and cast weights to the MXU operand dtype.  Padded rows/cols are zero, so
    padded hidden lanes stay exactly 0 through bias / LeakyReLU / residual."""
    d_in, hid = params["w_in"].shape
    d_out = params["w_out"].shape[1]
    hid_p = _round_up(hid, 128)

    def pad2(a, rows, cols, dt):
        a = a.astype(dt)
        return jnp.pad(a, ((0, rows - a.shape[0]), (0, cols - a.shape[1])))

    return dict(
        w_in=pad2(params["w_in"], d_in, hid_p, compute_dtype),
        b_in=pad2(params["b_in"], 1, hid_p, jnp.float32),
        w1a=pad2(params["w1a"], hid_p, hid_p, compute_dtype),
        b1a=pad2(params["b1a"], 1, hid_p, jnp.float32),
        w1b=pad2(params["w1b"], hid_p, hid_p, compute_dtype),
        b1b=pad2(params["b1b"], 1, hid_p, jnp.float32),
        w2a=pad2(params["w2a"], hid_p, hid_p, compute_dtype),
        b2a=pad2(params["b2a"], 1, hid_p, jnp.float32),
        w2b=pad2(params["w2b"], hid_p, hid_p, compute_dtype),
        b2b=pad2(params["b2b"], 1, hid_p, jnp.float32),
        w_out=pad2(params["w_out"], hid_p, d_out, compute_dtype),
        b_out=params["b_out"].astype(jnp.float32),
    )


_PARAM_ORDER = ("w_in", "b_in", "w1a", "b1a", "w1b", "b1b",
                "w2a", "b2a", "w2b", "b2b", "w_out", "b_out")


def subnet_forward(x, packed, *, tile_b=512):
    """x: (B, input_dim) f32.  packed: output of pack_params()."""
    B, d_in = x.shape
    hid_p = packed["w_in"].shape[1]
    d_out = packed["w_out"].shape[1]
    assert packed["w_in"].shape[0] == d_in

    TB = _choose_tb(B, tile_b)
    grid = (pl.cdiv(B, TB),)

    params = tuple(packed[k] for k in _PARAM_ORDER)
    wbytes = params[0].dtype.itemsize

    # x / out tiled along batch; weights & biases use a constant block index
    # (VMEM-resident across all grid steps).
    x_spec = pl.BlockSpec((TB, d_in), lambda i: (i, 0))
    out_spec = pl.BlockSpec((TB, d_out), lambda i: (i, 0))

    def const_spec(a, single_buffer):
        if single_buffer:
            # Constant block index -> nothing to prefetch; one buffer suffices.
            return pl.BlockSpec(a.shape, lambda i: (0,) * a.ndim,
                                pipeline_mode=pl.Buffered(1))
        return pl.BlockSpec(a.shape, lambda i: (0,) * a.ndim)

    # Cost hint for XLA scheduling.
    flops = 2 * B * (d_in * hid_p + 4 * hid_p * hid_p + hid_p * d_out)
    bytes_accessed = (int(x.size) * x.dtype.itemsize
                      + sum(int(a.size) * a.dtype.itemsize for a in params)
                      + B * d_out * 4)

    # Corrected VMEM budget: single-buffered params, double-buffered x/out,
    # f32 intermediates plus bf16 cast temporaries, 1.3x margin; capped by the
    # actual chip VMEM (v5e/v6e: 128 MiB, v7x: 64 MiB per TC).
    weight_bytes = (d_in * hid_p + 4 * hid_p * hid_p + hid_p * d_out) * wbytes
    bias_bytes = (5 * hid_p + d_out) * 4
    budget = int(1.3 * (weight_bytes + bias_bytes
                        + 2 * TB * d_in * 4
                        + 2 * TB * d_out * 4
                        + 6 * TB * hid_p * 4
                        + 4 * TB * hid_p * wbytes))
    vmem_limit = min(max(budget, 16 * 1024 * 1024),
                     int(0.85 * _vmem_cap_bytes()))

    def build(single_buffer):
        return pl.pallas_call(
            subnet_kernel,
            out_shape=jax.ShapeDtypeStruct((B, d_out), jnp.float32),
            grid=grid,
            in_specs=[x_spec] + [const_spec(a, single_buffer) for a in params],
            out_specs=out_spec,
            compiler_params=pltpu.CompilerParams(
                dimension_semantics=("parallel",),
                vmem_limit_bytes=vmem_limit),
            cost_estimate=pl.CostEstimate(
                flops=flops, transcendentals=0,
                bytes_accessed=bytes_accessed),
        )

    try:
        return build(single_buffer=True)(x, *params)
    except Exception:
        # Fallback if this JAX build rejects Buffered(1): default double
        # buffering is still correct, just uses a little more VMEM.
        return build(single_buffer=False)(x, *params)


def init_params(key, input_dim, hidden_dim, output_dim, dtype=jnp.float32):
    """Deterministic init mimicking nn.Linear's uniform(-1/sqrt(fan_in), +)."""
    def linear(key, fan_in, fan_out):
        kw, kb = jax.random.split(key)
        bound = 1.0 / jnp.sqrt(fan_in)
        # Torch stores W as (out, in); transpose to (in, out) for x @ W.
        w = jax.random.uniform(kw, (fan_out, fan_in), dtype, -bound, bound).T
        b = jax.random.uniform(kb, (1, fan_out), dtype, -bound, bound)
        return w, b

    keys = jax.random.split(key, 6)
    w_in, b_in = linear(keys[0], input_dim, hidden_dim)
    w1a, b1a = linear(keys[1], hidden_dim, hidden_dim)
    w1b, b1b = linear(keys[2], hidden_dim, hidden_dim)
    w2a, b2a = linear(keys[3], hidden_dim, hidden_dim)
    w2b, b2b = linear(keys[4], hidden_dim, hidden_dim)
    w_out, b_out = linear(keys[5], hidden_dim, output_dim)
    return dict(w_in=w_in, b_in=b_in,
                w1a=w1a, b1a=b1a, w1b=w1b, b1b=b1b,
                w2a=w2a, b2a=b2a, w2b=w2b, b2b=b2b,
                w_out=w_out, b_out=b_out)


def subnet_reference(x, p, compute_dtype=jnp.bfloat16):
    """Pure-JAX reference on the same bf16-quantized operands (f32 accumulate)."""
    hp = lax.Precision.HIGHEST

    def q(a):
        return a.astype(compute_dtype).astype(jnp.float32)

    x = q(x)
    w_in, w1a, w1b, w2a, w2b, w_out = (
        q(p[k]) for k in ("w_in", "w1a", "w1b", "w2a", "w2b", "w_out"))

    h = _leaky(jnp.dot(x, w_in, precision=hp) + p["b_in"])
    t = _leaky(jnp.dot(h, w1a, precision=hp) + p["b1a"])
    h = _leaky(jnp.dot(t, w1b, precision=hp) + p["b1b"] + 0.1 * h)
    t = _leaky(jnp.dot(h, w2a, precision=hp) + p["b2a"])
    h = _leaky(jnp.dot(t, w2b, precision=hp) + p["b2b"] + 0.1 * h)
    return jnp.dot(h, w_out, precision=hp) + p["b_out"]


if __name__ == "__main__":
    key = jax.random.PRNGKey(0)
    k_x, k_p = jax.random.split(key)

    B, INPUT_DIM, HIDDEN_DIM, OUTPUT_DIM = 64, 16, 32, 8
    x = jax.random.normal(k_x, (B, INPUT_DIM), dtype=jnp.float32)
    params = init_params(k_p, INPUT_DIM, HIDDEN_DIM, OUTPUT_DIM)

    packed = pack_params(params)   # one-time layout/cast pass (not per call)
    ref = subnet_reference(x, params)

    # Default tiling (TB=32 -> 2-step grid) and a 4-step grid.
    out = jax.block_until_ready(subnet_forward(x, packed))
    out_small_tile = jax.block_until_ready(subnet_forward(x, packed, tile_b=16))

    # Ragged batch -> partial edge block path.
    x_odd = x[:50]
    ref_odd = subnet_reference(x_odd, params)
    out_odd = jax.block_until_ready(subnet_forward(x_odd, packed, tile_b=32))

    assert out.shape == (B, OUTPUT_DIM)
    assert out_small_tile.shape == (B, OUTPUT_DIM)
    assert out_odd.shape == (50, OUTPUT_DIM)
    assert jnp.allclose(out, ref, atol=2e-2, rtol=2e-2), "mismatch (2-step grid)"
    assert jnp.allclose(out_small_tile, ref, atol=2e-2, rtol=2e-2), "mismatch (4-step grid)"
    assert jnp.allclose(out_odd, ref_odd, atol=2e-2, rtol=2e-2), "mismatch (ragged batch)"

    print("KERNEL_OK")
</pallas_src>

<mosaic_0001>
module attributes {stable_mosaic.version = 11 : i64} {
  func.func @subnet_kernel(%arg0: i32, %arg1: memref<32x16xf32, #tpu.memory_space<vmem>>, %arg2: memref<16x128xbf16, #tpu.memory_space<vmem>>, %arg3: memref<1x128xf32, #tpu.memory_space<vmem>>, %arg4: memref<128x128xbf16, #tpu.memory_space<vmem>>, %arg5: memref<1x128xf32, #tpu.memory_space<vmem>>, %arg6: memref<128x128xbf16, #tpu.memory_space<vmem>>, %arg7: memref<1x128xf32, #tpu.memory_space<vmem>>, %arg8: memref<128x128xbf16, #tpu.memory_space<vmem>>, %arg9: memref<1x128xf32, #tpu.memory_space<vmem>>, %arg10: memref<128x128xbf16, #tpu.memory_space<vmem>>, %arg11: memref<1x128xf32, #tpu.memory_space<vmem>>, %arg12: memref<128x8xbf16, #tpu.memory_space<vmem>>, %arg13: memref<1x8xf32, #tpu.memory_space<vmem>>, %arg14: memref<32x8xf32, #tpu.memory_space<vmem>>) attributes {dimension_semantics = [#tpu.dimension_semantics<parallel>], iteration_bounds = array<i64: 2>, scalar_prefetch = 0 : i64, scratch_operands = 0 : i64, tpu.core_type = #tpu.core_type<tc>, window_params = [{transform_indices = @transform_0, window_bounds = array<i64: 32, 16>}, {pipeline_mode = #tpu.pipeline_mode<synchronous>, transform_indices = @transform_1, window_bounds = array<i64: 16, 128>}, {pipeline_mode = #tpu.pipeline_mode<synchronous>, transform_indices = @transform_2, window_bounds = array<i64: 1, 128>}, {pipeline_mode = #tpu.pipeline_mode<synchronous>, transform_indices = @transform_3, window_bounds = array<i64: 128, 128>}, {pipeline_mode = #tpu.pipeline_mode<synchronous>, transform_indices = @transform_4, window_bounds = array<i64: 1, 128>}, {pipeline_mode = #tpu.pipeline_mode<synchronous>, transform_indices = @transform_5, window_bounds = array<i64: 128, 128>}, {pipeline_mode = #tpu.pipeline_mode<synchronous>, transform_indices = @transform_6, window_bounds = array<i64: 1, 128>}, {pipeline_mode = #tpu.pipeline_mode<synchronous>, transform_indices = @transform_7, window_bounds = array<i64: 128, 128>}, {pipeline_mode = #tpu.pipeline_mode<synchronous>, transform_indices = @transform_8, window_bounds = array<i64: 1, 128>}, {pipeline_mode = #tpu.pipeline_mode<synchronous>, transform_indices = @transform_9, window_bounds = array<i64: 128, 128>}, {pipeline_mode = #tpu.pipeline_mode<synchronous>, transform_indices = @transform_10, window_bounds = array<i64: 1, 128>}, {pipeline_mode = #tpu.pipeline_mode<synchronous>, transform_indices = @transform_11, window_bounds = array<i64: 128, 8>}, {pipeline_mode = #tpu.pipeline_mode<synchronous>, transform_indices = @transform_12, window_bounds = array<i64: 1, 8>}, {transform_indices = @transform_13, window_bounds = array<i64: 32, 8>}]} {
    %c0 = arith.constant 0 : index
    %c0_0 = arith.constant 0 : index
    %0 = vector.load %arg1[%c0, %c0_0] : memref<32x16xf32, #tpu.memory_space<vmem>>, vector<32x16xf32>
    %1 = arith.truncf %0 : vector<32x16xf32> to vector<32x16xbf16>
    %c0_1 = arith.constant 0 : index
    %c0_2 = arith.constant 0 : index
    %2 = vector.load %arg2[%c0_1, %c0_2] : memref<16x128xbf16, #tpu.memory_space<vmem>>, vector<16x128xbf16>
    %cst = arith.constant dense<0.000000e+00> : vector<32x128xf32>
    %3 = tpu.matmul %1, %2, %cst {dimension_numbers = #tpu.dot_dimension_numbers<[1], [0], [0], [1], [0, 0, 1, 1], [], []>} : vector<32x16xbf16>, vector<16x128xbf16>, vector<32x128xf32> -> vector<32x128xf32>
    %c0_3 = arith.constant 0 : index
    %c0_4 = arith.constant 0 : index
    %4 = vector.load %arg3[%c0_3, %c0_4] : memref<1x128xf32, #tpu.memory_space<vmem>>, vector<1x128xf32>
    %5 = vector.broadcast %4 : vector<1x128xf32> to vector<32x128xf32>
    %6 = arith.addf %3, %5 : vector<32x128xf32>
    %cst_5 = arith.constant 0.00999999977 : f32
    %7 = vector.broadcast %cst_5 : f32 to vector<32x128xf32>
    %8 = arith.mulf %7, %6 : vector<32x128xf32>
    %9 = arith.maximumf %6, %8 : vector<32x128xf32>
    %10 = arith.truncf %9 : vector<32x128xf32> to vector<32x128xbf16>
    %c0_6 = arith.constant 0 : index
    %c0_7 = arith.constant 0 : index
    %11 = vector.load %arg4[%c0_6, %c0_7] : memref<128x128xbf16, #tpu.memory_space<vmem>>, vector<128x128xbf16>
    %cst_8 = arith.constant dense<0.000000e+00> : vector<32x128xf32>
    %12 = tpu.matmul %10, %11, %cst_8 {dimension_numbers = #tpu.dot_dimension_numbers<[1], [0], [0], [1], [0, 0, 1, 1], [], []>} : vector<32x128xbf16>, vector<128x128xbf16>, vector<32x128xf32> -> vector<32x128xf32>
    %c0_9 = arith.constant 0 : index
    %c0_10 = arith.constant 0 : index
    %13 = vector.load %arg5[%c0_9, %c0_10] : memref<1x128xf32, #tpu.memory_space<vmem>>, vector<1x128xf32>
    %14 = vector.broadcast %13 : vector<1x128xf32> to vector<32x128xf32>
    %15 = arith.addf %12, %14 : vector<32x128xf32>
    %cst_11 = arith.constant 0.00999999977 : f32
    %16 = vector.broadcast %cst_11 : f32 to vector<32x128xf32>
    %17 = arith.mulf %16, %15 : vector<32x128xf32>
    %18 = arith.maximumf %15, %17 : vector<32x128xf32>
    %19 = arith.truncf %18 : vector<32x128xf32> to vector<32x128xbf16>
    %c0_12 = arith.constant 0 : index
    %c0_13 = arith.constant 0 : index
    %20 = vector.load %arg6[%c0_12, %c0_13] : memref<128x128xbf16, #tpu.memory_space<vmem>>, vector<128x128xbf16>
    %cst_14 = arith.constant dense<0.000000e+00> : vector<32x128xf32>
    %21 = tpu.matmul %19, %20, %cst_14 {dimension_numbers = #tpu.dot_dimension_numbers<[1], [0], [0], [1], [0, 0, 1, 1], [], []>} : vector<32x128xbf16>, vector<128x128xbf16>, vector<32x128xf32> -> vector<32x128xf32>
    %c0_15 = arith.constant 0 : index
    %c0_16 = arith.constant 0 : index
    %22 = vector.load %arg7[%c0_15, %c0_16] : memref<1x128xf32, #tpu.memory_space<vmem>>, vector<1x128xf32>
    %23 = vector.broadcast %22 : vector<1x128xf32> to vector<32x128xf32>
    %24 = arith.addf %21, %23 : vector<32x128xf32>
    %cst_17 = arith.constant 1.000000e-01 : f32
    %25 = vector.broadcast %cst_17 : f32 to vector<32x128xf32>
    %26 = arith.mulf %25, %9 : vector<32x128xf32>
    %27 = arith.addf %24, %26 : vector<32x128xf32>
    %cst_18 = arith.constant 0.00999999977 : f32
    %28 = vector.broadcast %cst_18 : f32 to vector<32x128xf32>
    %29 = arith.mulf %28, %27 : vector<32x128xf32>
    %30 = arith.maximumf %27, %29 : vector<32x128xf32>
    %31 = arith.truncf %30 : vector<32x128xf32> to vector<32x128xbf16>
    %c0_19 = arith.constant 0 : index
    %c0_20 = arith.constant 0 : index
    %32 = vector.load %arg8[%c0_19, %c0_20] : memref<128x128xbf16, #tpu.memory_space<vmem>>, vector<128x128xbf16>
    %cst_21 = arith.constant dense<0.000000e+00> : vector<32x128xf32>
    %33 = tpu.matmul %31, %32, %cst_21 {dimension_numbers = #tpu.dot_dimension_numbers<[1], [0], [0], [1], [0, 0, 1, 1], [], []>} : vector<32x128xbf16>, vector<128x128xbf16>, vector<32x128xf32> -> vector<32x128xf32>
    %c0_22 = arith.constant 0 : index
    %c0_23 = arith.constant 0 : index
    %34 = vector.load %arg9[%c0_22, %c0_23] : memref<1x128xf32, #tpu.memory_space<vmem>>, vector<1x128xf32>
    %35 = vector.broadcast %34 : vector<1x128xf32> to vector<32x128xf32>
    %36 = arith.addf %33, %35 : vector<32x128xf32>
    %cst_24 = arith.constant 0.00999999977 : f32
    %37 = vector.broadcast %cst_24 : f32 to vector<32x128xf32>
    %38 = arith.mulf %37, %36 : vector<32x128xf32>
    %39 = arith.maximumf %36, %38 : vector<32x128xf32>
    %40 = arith.truncf %39 : vector<32x128xf32> to vector<32x128xbf16>
    %c0_25 = arith.constant 0 : index
    %c0_26 = arith.constant 0 : index
    %41 = vector.load %arg10[%c0_25, %c0_26] : memref<128x128xbf16, #tpu.memory_space<vmem>>, vector<128x128xbf16>
    %cst_27 = arith.constant dense<0.000000e+00> : vector<32x128xf32>
    %42 = tpu.matmul %40, %41, %cst_27 {dimension_numbers = #tpu.dot_dimension_numbers<[1], [0], [0], [1], [0, 0, 1, 1], [], []>} : vector<32x128xbf16>, vector<128x128xbf16>, vector<32x128xf32> -> vector<32x128xf32>
    %c0_28 = arith.constant 0 : index
    %c0_29 = arith.constant 0 : index
    %43 = vector.load %arg11[%c0_28, %c0_29] : memref<1x128xf32, #tpu.memory_space<vmem>>, vector<1x128xf32>
    %44 = vector.broadcast %43 : vector<1x128xf32> to vector<32x128xf32>
    %45 = arith.addf %42, %44 : vector<32x128xf32>
    %cst_30 = arith.constant 1.000000e-01 : f32
    %46 = vector.broadcast %cst_30 : f32 to vector<32x128xf32>
    %47 = arith.mulf %46, %30 : vector<32x128xf32>
    %48 = arith.addf %45, %47 : vector<32x128xf32>
    %cst_31 = arith.constant 0.00999999977 : f32
    %49 = vector.broadcast %cst_31 : f32 to vector<32x128xf32>
    %50 = arith.mulf %49, %48 : vector<32x128xf32>
    %51 = arith.maximumf %48, %50 : vector<32x128xf32>
    %52 = arith.truncf %51 : vector<32x128xf32> to vector<32x128xbf16>
    %c0_32 = arith.constant 0 : index
    %c0_33 = arith.constant 0 : index
    %53 = vector.load %arg12[%c0_32, %c0_33] : memref<128x8xbf16, #tpu.memory_space<vmem>>, vector<128x8xbf16>
    %cst_34 = arith.constant dense<0.000000e+00> : vector<32x8xf32>
    %54 = tpu.matmul %52, %53, %cst_34 {dimension_numbers = #tpu.dot_dimension_numbers<[1], [0], [0], [1], [0, 0, 1, 1], [], []>} : vector<32x128xbf16>, vector<128x8xbf16>, vector<32x8xf32> -> vector<32x8xf32>
    %c0_35 = arith.constant 0 : index
    %c0_36 = arith.constant 0 : index
    %55 = vector.load %arg13[%c0_35, %c0_36] : memref<1x8xf32, #tpu.memory_space<vmem>>, vector<1x8xf32>
    %56 = vector.broadcast %55 : vector<1x8xf32> to vector<32x8xf32>
    %57 = arith.addf %54, %56 : vector<32x8xf32>
    %c0_37 = arith.constant 0 : index
    %c0_38 = arith.constant 0 : index
    %58 = vector.load %arg14[%c0_37, %c0_38] : memref<32x8xf32, #tpu.memory_space<vmem>>, vector<32x8xf32>
    tpu.vector_store %arg14[%c0_37, %c0_38], %57 {strides = array<i32>} : memref<32x8xf32, #tpu.memory_space<vmem>>, vector<32x8xf32>,
    return
  }
  func.func @transform_0(%arg0: i32) -> (i32, i32) {
    %c0_i32 = arith.constant 0 : i32
    %c0_i32_0 = arith.constant 0 : i32
    return %arg0, %c0_i32 : i32, i32
  }
  func.func @transform_1(%arg0: i32) -> (i32, i32) {
    %c0_i32 = arith.constant 0 : i32
    %c0_i32_0 = arith.constant 0 : i32
    %c0_i32_1 = arith.constant 0 : i32
    return %c0_i32, %c0_i32_0 : i32, i32
  }
  func.func @transform_2(%arg0: i32) -> (i32, i32) {
    %c0_i32 = arith.constant 0 : i32
    %c0_i32_0 = arith.constant 0 : i32
    %c0_i32_1 = arith.constant 0 : i32
    return %c0_i32, %c0_i32_0 : i32, i32
  }
  func.func @transform_3(%arg0: i32) -> (i32, i32) {
    %c0_i32 = arith.constant 0 : i32
    %c0_i32_0 = arith.constant 0 : i32
    %c0_i32_1 = arith.constant 0 : i32
    return %c0_i32, %c0_i32_0 : i32, i32
  }
  func.func @transform_4(%arg0: i32) -> (i32, i32) {
    %c0_i32 = arith.constant 0 : i32
    %c0_i32_0 = arith.constant 0 : i32
    %c0_i32_1 = arith.constant 0 : i32
    return %c0_i32, %c0_i32_0 : i32, i32
  }
  func.func @transform_5(%arg0: i32) -> (i32, i32) {
    %c0_i32 = arith.constant 0 : i32
    %c0_i32_0 = arith.constant 0 : i32
    %c0_i32_1 = arith.constant 0 : i32
    return %c0_i32, %c0_i32_0 : i32, i32
  }
  func.func @transform_6(%arg0: i32) -> (i32, i32) {
    %c0_i32 = arith.constant 0 : i32
    %c0_i32_0 = arith.constant 0 : i32
    %c0_i32_1 = arith.constant 0 : i32
    return %c0_i32, %c0_i32_0 : i32, i32
  }
  func.func @transform_7(%arg0: i32) -> (i32, i32) {
    %c0_i32 = arith.constant 0 : i32
    %c0_i32_0 = arith.constant 0 : i32
    %c0_i32_1 = arith.constant 0 : i32
    return %c0_i32, %c0_i32_0 : i32, i32
  }
  func.func @transform_8(%arg0: i32) -> (i32, i32) {
    %c0_i32 = arith.constant 0 : i32
    %c0_i32_0 = arith.constant 0 : i32
    %c0_i32_1 = arith.constant 0 : i32
    return %c0_i32, %c0_i32_0 : i32, i32
  }
  func.func @transform_9(%arg0: i32) -> (i32, i32) {
    %c0_i32 = arith.constant 0 : i32
    %c0_i32_0 = arith.constant 0 : i32
    %c0_i32_1 = arith.constant 0 : i32
    return %c0_i32, %c0_i32_0 : i32, i32
  }
  func.func @transform_10(%arg0: i32) -> (i32, i32) {
    %c0_i32 = arith.constant 0 : i32
    %c0_i32_0 = arith.constant 0 : i32
    %c0_i32_1 = arith.constant 0 : i32
    return %c0_i32, %c0_i32_0 : i32, i32
  }
  func.func @transform_11(%arg0: i32) -> (i32, i32) {
    %c0_i32 = arith.constant 0 : i32
    %c0_i32_0 = arith.constant 0 : i32
    %c0_i32_1 = arith.constant 0 : i32
    return %c0_i32, %c0_i32_0 : i32, i32
  }
  func.func @transform_12(%arg0: i32) -> (i32, i32) {
    %c0_i32 = arith.constant 0 : i32
    %c0_i32_0 = arith.constant 0 : i32
    %c0_i32_1 = arith.constant 0 : i32
    return %c0_i32, %c0_i32_0 : i32, i32
  }
  func.func @transform_13(%arg0: i32) -> (i32, i32) {
    %c0_i32 = arith.constant 0 : i32
    %c0_i32_0 = arith.constant 0 : i32
    return %arg0, %c0_i32 : i32, i32
  }
}

module attributes {stable_mosaic.version = 11 : i64} {
  func.func @subnet_kernel(%arg0: i32, %arg1: memref<32x16xf32, #tpu.memory_space<vmem>>, %arg2: memref<16x128xbf16, #tpu.memory_space<vmem>>, %arg3: memref<1x128xf32, #tpu.memory_space<vmem>>, %arg4: memref<128x128xbf16, #tpu.memory_space<vmem>>, %arg5: memref<1x128xf32, #tpu.memory_space<vmem>>, %arg6: memref<128x128xbf16, #tpu.memory_space<vmem>>, %arg7: memref<1x128xf32, #tpu.memory_space<vmem>>, %arg8: memref<128x128xbf16, #tpu.memory_space<vmem>>, %arg9: memref<1x128xf32, #tpu.memory_space<vmem>>, %arg10: memref<128x128xbf16, #tpu.memory_space<vmem>>, %arg11: memref<1x128xf32, #tpu.memory_space<vmem>>, %arg12: memref<128x8xbf16, #tpu.memory_space<vmem>>, %arg13: memref<1x8xf32, #tpu.memory_space<vmem>>, %arg14: memref<32x8xf32, #tpu.memory_space<vmem>>) attributes {dimension_semantics = [#tpu.dimension_semantics<parallel>], iteration_bounds = array<i64: 2>, scalar_prefetch = 0 : i64, scratch_operands = 0 : i64, tpu.core_type = #tpu.core_type<tc>, window_params = [{transform_indices = @transform_0, window_bounds = array<i64: 32, 16>}, {pipeline_mode = #tpu.pipeline_mode<synchronous>, transform_indices = @transform_1, window_bounds = array<i64: 16, 128>}, {pipeline_mode = #tpu.pipeline_mode<synchronous>, transform_indices = @transform_2, window_bounds = array<i64: 1, 128>}, {pipeline_mode = #tpu.pipeline_mode<synchronous>, transform_indices = @transform_3, window_bounds = array<i64: 128, 128>}, {pipeline_mode = #tpu.pipeline_mode<synchronous>, transform_indices = @transform_4, window_bounds = array<i64: 1, 128>}, {pipeline_mode = #tpu.pipeline_mode<synchronous>, transform_indices = @transform_5, window_bounds = array<i64: 128, 128>}, {pipeline_mode = #tpu.pipeline_mode<synchronous>, transform_indices = @transform_6, window_bounds = array<i64: 1, 128>}, {pipeline_mode = #tpu.pipeline_mode<synchronous>, transform_indices = @transform_7, window_bounds = array<i64: 128, 128>}, {pipeline_mode = #tpu.pipeline_mode<synchronous>, transform_indices = @transform_8, window_bounds = array<i64: 1, 128>}, {pipeline_mode = #tpu.pipeline_mode<synchronous>, transform_indices = @transform_9, window_bounds = array<i64: 128, 128>}, {pipeline_mode = #tpu.pipeline_mode<synchronous>, transform_indices = @transform_10, window_bounds = array<i64: 1, 128>}, {pipeline_mode = #tpu.pipeline_mode<synchronous>, transform_indices = @transform_11, window_bounds = array<i64: 128, 8>}, {pipeline_mode = #tpu.pipeline_mode<synchronous>, transform_indices = @transform_12, window_bounds = array<i64: 1, 8>}, {transform_indices = @transform_13, window_bounds = array<i64: 32, 8>}]} {
    %c0 = arith.constant 0 : index
    %c0_0 = arith.constant 0 : index
    %0 = vector.load %arg1[%c0, %c0_0] : memref<32x16xf32, #tpu.memory_space<vmem>>, vector<32x16xf32>
    %1 = arith.truncf %0 : vector<32x16xf32> to vector<32x16xbf16>
    %c0_1 = arith.constant 0 : index
    %c0_2 = arith.constant 0 : index
    %2 = vector.load %arg2[%c0_1, %c0_2] : memref<16x128xbf16, #tpu.memory_space<vmem>>, vector<16x128xbf16>
    %cst = arith.constant dense<0.000000e+00> : vector<32x128xf32>
    %3 = tpu.matmul %1, %2, %cst {dimension_numbers = #tpu.dot_dimension_numbers<[1], [0], [0], [1], [0, 0, 1, 1], [], []>} : vector<32x16xbf16>, vector<16x128xbf16>, vector<32x128xf32> -> vector<32x128xf32>
    %c0_3 = arith.constant 0 : index
    %c0_4 = arith.constant 0 : index
    %4 = vector.load %arg3[%c0_3, %c0_4] : memref<1x128xf32, #tpu.memory_space<vmem>>, vector<1x128xf32>
    %5 = vector.broadcast %4 : vector<1x128xf32> to vector<32x128xf32>
    %6 = arith.addf %3, %5 : vector<32x128xf32>
    %cst_5 = arith.constant 0.00999999977 : f32
    %7 = vector.broadcast %cst_5 : f32 to vector<32x128xf32>
    %8 = arith.mulf %7, %6 : vector<32x128xf32>
    %9 = arith.maximumf %6, %8 : vector<32x128xf32>
    %10 = arith.truncf %9 : vector<32x128xf32> to vector<32x128xbf16>
    %c0_6 = arith.constant 0 : index
    %c0_7 = arith.constant 0 : index
    %11 = vector.load %arg4[%c0_6, %c0_7] : memref<128x128xbf16, #tpu.memory_space<vmem>>, vector<128x128xbf16>
    %cst_8 = arith.constant dense<0.000000e+00> : vector<32x128xf32>
    %12 = tpu.matmul %10, %11, %cst_8 {dimension_numbers = #tpu.dot_dimension_numbers<[1], [0], [0], [1], [0, 0, 1, 1], [], []>} : vector<32x128xbf16>, vector<128x128xbf16>, vector<32x128xf32> -> vector<32x128xf32>
    %c0_9 = arith.constant 0 : index
    %c0_10 = arith.constant 0 : index
    %13 = vector.load %arg5[%c0_9, %c0_10] : memref<1x128xf32, #tpu.memory_space<vmem>>, vector<1x128xf32>
    %14 = vector.broadcast %13 : vector<1x128xf32> to vector<32x128xf32>
    %15 = arith.addf %12, %14 : vector<32x128xf32>
    %cst_11 = arith.constant 0.00999999977 : f32
    %16 = vector.broadcast %cst_11 : f32 to vector<32x128xf32>
    %17 = arith.mulf %16, %15 : vector<32x128xf32>
    %18 = arith.maximumf %15, %17 : vector<32x128xf32>
    %19 = arith.truncf %18 : vector<32x128xf32> to vector<32x128xbf16>
    %c0_12 = arith.constant 0 : index
    %c0_13 = arith.constant 0 : index
    %20 = vector.load %arg6[%c0_12, %c0_13] : memref<128x128xbf16, #tpu.memory_space<vmem>>, vector<128x128xbf16>
    %cst_14 = arith.constant dense<0.000000e+00> : vector<32x128xf32>
    %21 = tpu.matmul %19, %20, %cst_14 {dimension_numbers = #tpu.dot_dimension_numbers<[1], [0], [0], [1], [0, 0, 1, 1], [], []>} : vector<32x128xbf16>, vector<128x128xbf16>, vector<32x128xf32> -> vector<32x128xf32>
    %c0_15 = arith.constant 0 : index
    %c0_16 = arith.constant 0 : index
    %22 = vector.load %arg7[%c0_15, %c0_16] : memref<1x128xf32, #tpu.memory_space<vmem>>, vector<1x128xf32>
    %23 = vector.broadcast %22 : vector<1x128xf32> to vector<32x128xf32>
    %24 = arith.addf %21, %23 : vector<32x128xf32>
    %cst_17 = arith.constant 1.000000e-01 : f32
    %25 = vector.broadcast %cst_17 : f32 to vector<32x128xf32>
    %26 = arith.mulf %25, %9 : vector<32x128xf32>
    %27 = arith.addf %24, %26 : vector<32x128xf32>
    %cst_18 = arith.constant 0.00999999977 : f32
    %28 = vector.broadcast %cst_18 : f32 to vector<32x128xf32>
    %29 = arith.mulf %28, %27 : vector<32x128xf32>
    %30 = arith.maximumf %27, %29 : vector<32x128xf32>
    %31 = arith.truncf %30 : vector<32x128xf32> to vector<32x128xbf16>
    %c0_19 = arith.constant 0 : index
    %c0_20 = arith.constant 0 : index
    %32 = vector.load %arg8[%c0_19, %c0_20] : memref<128x128xbf16, #tpu.memory_space<vmem>>, vector<128x128xbf16>
    %cst_21 = arith.constant dense<0.000000e+00> : vector<32x128xf32>
    %33 = tpu.matmul %31, %32, %cst_21 {dimension_numbers = #tpu.dot_dimension_numbers<[1], [0], [0], [1], [0, 0, 1, 1], [], []>} : vector<32x128xbf16>, vector<128x128xbf16>, vector<32x128xf32> -> vector<32x128xf32>
    %c0_22 = arith.constant 0 : index
    %c0_23 = arith.constant 0 : index
    %34 = vector.load %arg9[%c0_22, %c0_23] : memref<1x128xf32, #tpu.memory_space<vmem>>, vector<1x128xf32>
    %35 = vector.broadcast %34 : vector<1x128xf32> to vector<32x128xf32>
    %36 = arith.addf %33, %35 : vector<32x128xf32>
    %cst_24 = arith.constant 0.00999999977 : f32
    %37 = vector.broadcast %cst_24 : f32 to vector<32x128xf32>
    %38 = arith.mulf %37, %36 : vector<32x128xf32>
    %39 = arith.maximumf %36, %38 : vector<32x128xf32>
    %40 = arith.truncf %39 : vector<32x128xf32> to vector<32x128xbf16>
    %c0_25 = arith.constant 0 : index
    %c0_26 = arith.constant 0 : index
    %41 = vector.load %arg10[%c0_25, %c0_26] : memref<128x128xbf16, #tpu.memory_space<vmem>>, vector<128x128xbf16>
    %cst_27 = arith.constant dense<0.000000e+00> : vector<32x128xf32>
    %42 = tpu.matmul %40, %41, %cst_27 {dimension_numbers = #tpu.dot_dimension_numbers<[1], [0], [0], [1], [0, 0, 1, 1], [], []>} : vector<32x128xbf16>, vector<128x128xbf16>, vector<32x128xf32> -> vector<32x128xf32>
    %c0_28 = arith.constant 0 : index
    %c0_29 = arith.constant 0 : index
    %43 = vector.load %arg11[%c0_28, %c0_29] : memref<1x128xf32, #tpu.memory_space<vmem>>, vector<1x128xf32>
    %44 = vector.broadcast %43 : vector<1x128xf32> to vector<32x128xf32>
    %45 = arith.addf %42, %44 : vector<32x128xf32>
    %cst_30 = arith.constant 1.000000e-01 : f32
    %46 = vector.broadcast %cst_30 : f32 to vector<32x128xf32>
    %47 = arith.mulf %46, %30 : vector<32x128xf32>
    %48 = arith.addf %45, %47 : vector<32x128xf32>
    %cst_31 = arith.constant 0.00999999977 : f32
    %49 = vector.broadcast %cst_31 : f32 to vector<32x128xf32>
    %50 = arith.mulf %49, %48 : vector<32x128xf32>
    %51 = arith.maximumf %48, %50 : vector<32x128xf32>
    %52 = arith.truncf %51 : vector<32x128xf32> to vector<32x128xbf16>
    %c0_32 = arith.constant 0 : index
    %c0_33 = arith.constant 0 : index
    %53 = vector.load %arg12[%c0_32, %c0_33] : memref<128x8xbf16, #tpu.memory_space<vmem>>, vector<128x8xbf16>
    %cst_34 = arith.constant dense<0.000000e+00> : vector<32x8xf32>
    %54 = tpu.matmul %52, %53, %cst_34 {dimension_numbers = #tpu.dot_dimension_numbers<[1], [0], [0], [1], [0, 0, 1, 1], [], []>} : vector<32x128xbf16>, vector<128x8xbf16>, vector<32x8xf32> -> vector<32x8xf32>
    %c0_35 = arith.constant 0 : index
    %c0_36 = arith.constant 0 : index
    %55 = vector.load %arg13[%c0_35, %c0_36] : memref<1x8xf32, #tpu.memory_space<vmem>>, vector<1x8xf32>
    %56 = vector.broadcast %55 : vector<1x8xf32> to vector<32x8xf32>
    %57 = arith.addf %54, %56 : vector<32x8xf32>
    %c0_37 = arith.constant 0 : index
    %c0_38 = arith.constant 0 : index
    %58 = vector.load %arg14[%c0_37, %c0_38] : memref<32x8xf32, #tpu.memory_space<vmem>>, vector<32x8xf32>
    tpu.vector_store %arg14[%c0_37, %c0_38], %57 {strides = array<i32>} : memref<32x8xf32, #tpu.memory_space<vmem>>, vector<32x8xf32>,
    return
  }
  func.func @transform_0(%arg0: i32) -> (i32, i32) {
    %c0_i32 = arith.constant 0 : i32
    %c0_i32_0 = arith.constant 0 : i32
    return %arg0, %c0_i32 : i32, i32
  }
  func.func @transform_1(%arg0: i32) -> (i32, i32) {
    %c0_i32 = arith.constant 0 : i32
    %c0_i32_0 = arith.constant 0 : i32
    %c0_i32_1 = arith.constant 0 : i32
    return %c0_i32, %c0_i32_0 : i32, i32
  }
  func.func @transform_2(%arg0: i32) -> (i32, i32) {
    %c0_i32 = arith.constant 0 : i32
    %c0_i32_0 = arith.constant 0 : i32
    %c0_i32_1 = arith.constant 0 : i32
    return %c0_i32, %c0_i32_0 : i32, i32
  }
  func.func @transform_3(%arg0: i32) -> (i32, i32) {
    %c0_i32 = arith.constant 0 : i32
    %c0_i32_0 = arith.constant 0 : i32
    %c0_i32_1 = arith.constant 0 : i32
    return %c0_i32, %c0_i32_0 : i32, i32
  }
  func.func @transform_4(%arg0: i32) -> (i32, i32) {
    %c0_i32 = arith.constant 0 : i32
    %c0_i32_0 = arith.constant 0 : i32
    %c0_i32_1 = arith.constant 0 : i32
    return %c0_i32, %c0_i32_0 : i32, i32
  }
  func.func @transform_5(%arg0: i32) -> (i32, i32) {
    %c0_i32 = arith.constant 0 : i32
    %c0_i32_0 = arith.constant 0 : i32
    %c0_i32_1 = arith.constant 0 : i32
    return %c0_i32, %c0_i32_0 : i32, i32
  }
  func.func @transform_6(%arg0: i32) -> (i32, i32) {
    %c0_i32 = arith.constant 0 : i32
    %c0_i32_0 = arith.constant 0 : i32
    %c0_i32_1 = arith.constant 0 : i32
    return %c0_i32, %c0_i32_0 : i32, i32
  }
  func.func @transform_7(%arg0: i32) -> (i32, i32) {
    %c0_i32 = arith.constant 0 : i32
    %c0_i32_0 = arith.constant 0 : i32
    %c0_i32_1 = arith.constant 0 : i32
    return %c0_i32, %c0_i32_0 : i32, i32
  }
  func.func @transform_8(%arg0: i32) -> (i32, i32) {
    %c0_i32 = arith.constant 0 : i32
    %c0_i32_0 = arith.constant 0 : i32
    %c0_i32_1 = arith.constant 0 : i32
    return %c0_i32, %c0_i32_0 : i32, i32
  }
  func.func @transform_9(%arg0: i32) -> (i32, i32) {
    %c0_i32 = arith.constant 0 : i32
    %c0_i32_0 = arith.constant 0 : i32
    %c0_i32_1 = arith.constant 0 : i32
    return %c0_i32, %c0_i32_0 : i32, i32
  }
  func.func @transform_10(%arg0: i32) -> (i32, i32) {
    %c0_i32 = arith.constant 0 : i32
    %c0_i32_0 = arith.constant 0 : i32
    %c0_i32_1 = arith.constant 0 : i32
    return %c0_i32, %c0_i32_0 : i32, i32
  }
  func.func @transform_11(%arg0: i32) -> (i32, i32) {
    %c0_i32 = arith.constant 0 : i32
    %c0_i32_0 = arith.constant 0 : i32
    %c0_i32_1 = arith.constant 0 : i32
    return %c0_i32, %c0_i32_0 : i32, i32
  }
  func.func @transform_12(%arg0: i32) -> (i32, i32) {
    %c0_i32 = arith.constant 0 : i32
    %c0_i32_0 = arith.constant 0 : i32
    %c0_i32_1 = arith.constant 0 : i32
    return %c0_i32, %c0_i32_0 : i32, i32
  }
  func.func @transform_13(%arg0: i32) -> (i32, i32) {
    %c0_i32 = arith.constant 0 : i32
    %c0_i32_0 = arith.constant 0 : i32
    return %arg0, %c0_i32 : i32, i32
  }
}

</mosaic_0001>

<bundles_post_ra>
// kernel: tpu_custom_call.1
= control target key start
LH: loop header
LB: loop body
LE: loop exit
PB: predicated region body
PF: predicated region fallthrough
CT: control target
= control target key end

     0   :  { %18 = vsyncpa [#allocation3], 0  ;;  %s1970_s0 = inlined_call_operand.vmem [shape: f32[64,16], index: 0, kind: input, shape index: {}]   ;;  %s1971_s1 = inlined_call_operand.vmem [shape: bf16[16,128], index: 1, kind: input, shape index: {}]   ;;  %s1972_s2 = inlined_call_operand.vmem [shape: f32[1,128], index: 2, kind: input, shape index: {}]   ;;  %s1973_s3 = inlined_call_operand.vmem [shape: bf16[128,128], index: 3, kind: input, shape index: {}]   ;;  %s1974_s4 = inlined_call_operand.vmem [shape: f32[1,128], index: 4, kind: input, shape index: {}]   ;;  %s1975_s5 = inlined_call_operand.vmem [shape: bf16[128,128], index: 5, kind: input, shape index: {}]   ;;  %s1976_s6 = inlined_call_operand.vmem [shape: f32[1,128], index: 6, kind: input, shape index: {}]   ;;  %s1977_s7 = inlined_call_operand.hbm [shape: bf16[128,128], index: 7, kind: input, shape index: {}]   ;;  %s1978_s8 = inlined_call_operand.vmem [shape: f32[1,128], index: 8, kind: input, shape index: {}]   ;;  %s1979_s9 = inlined_call_operand.hbm [shape: bf16[128,128], index: 9, kind: input, shape index: {}]   ;;  %s1980_s10 = inlined_call_operand.vmem [shape: f32[1,128], index: 10, kind: input, shape index: {}]   ;;  %s1981_s11 = inlined_call_operand.vmem [shape: bf16[128,8], index: 11, kind: input, shape index: {}]   ;;  %s1982_s12 = inlined_call_operand.vmem [shape: f32[1,8], index: 12, kind: input, shape index: {}]   ;;  %s1983_s13 = inlined_call_operand.vmem [shape: f32[64,8], index: 13, kind: output, shape index: {}]  }
   0x1   :  { %19 = vsyncpa [#allocation5], 0  ;;  %s1742_s25 = smov 0  }
   0x2 LB: > { %s1987_s26 = sadd.s32 4294967295, %s1666_s25   ;;  %p1303_p0 = scmp.ge.s32.totalorder %s1666_s25, 1  ;;  %s1666_s25 = sphi %s1742_s25, %s25_s25  }
   0x3   : > { %p334_p1 = scmp.lt.s32.totalorder %s1666_s25, 3  ;;  %s1668_s27 = smov [#allocation2]  }
   0x4   : > { %s364_s28 = sshll.u32 %s1668_s27, 4  ;;  %p1756_p3 = scmp.eq.s32.totalorder %s1987_s26, 0  ;;  %s365_s28 = int_to_ptr.vmem [resolvable:$true] %s364_s28 }
   0x5   : > { %p1750_p2 = pnand %p1303_p0, %p334_p1  ;;  %s1669_s14 = smov [#allocation4]  }
   0x6   : > { %s1989_s30 = scalar_select %p1756_p3, 1, 0 }
   0x7   : > { %s1988_s29 = scalar_select %p1750_p2, 1, 0 }
   0x8   : > { %p1532_p4 = pneg %p1750_p2  ;;  %s380_s15 = sshll.u32 %s1669_s14, 4  ;;  %s1768_s15 = int_to_ptr.vmem [resolvable:$true] %s380_s15 }
   0x9   : > { %s1596_s19 = scalar_lea.hbm %s1977_s7, 1024 }
   0xa   : > { %p1764_p5 = pnand %p1756_p3, %p1532_p4  ;;  %p1597_p6 = scmp.ne.s32.totalorder %s1977_s7, %s1596_s19 }
   0xb   : > { %p1603_p10 = scmp.lt.u32.totalorder %s1596_s19, %s1977_s7 }
   0xc   : > { %p1598_p7 = pneg %p1764_p5 }
   0xe   : > { %p1599_p8 = pnand %p1598_p7, %p1597_p6 }
  0x10   : > { %p1600_p9 = pneg %p1599_p8 }
  0x12   : > { %p1605_p11 = pnand %p1603_p10, %p1600_p9 }
  0x14   : > { %1608 = shalt.err (!%p1605_p11)
}
  0x15   : > { %s1609_s24 = scalar_lea.vmem %s365_s28, 1024  ;;  %p1617_p1 = scmp.lt.s32.totalorder %s365_s28, %s365_s28 }
  0x16   : > { %p1610_p12 = scmp.ne.s32.totalorder %s365_s28, %s1609_s24  ;;  %p1618_p4 = scmp.lt.s32.totalorder %s1609_s24, %s1609_s24 }
  0x18   : > { %p1612_p13 = pnand %p1610_p12, %p1598_p7  ;;  %p1619_p3 = por %p1618_p4, %p1617_p1 }
  0x1a   : > { %p1613_p0 = pneg %p1612_p13 }
  0x1c   : > { %p1620_p2 = pnand %p1619_p3, %p1613_p0 }
  0x1e   : > { %1623 = shalt.err (!%p1620_p2)
}
  0x1f   : > { %s1670_s27 = smov 64   ;;  %s1671_s14 = smov 4  }
  0x20   : > { %1535 = dma.hbm_to_vmem [thread:$0]  (!%p1764_p5), %s1977_s7, 1024, %s365_s28, [#allocation3], %s1670_s27, %s1670_s27, %s1671_s14  }
  0x21   : > { %s1624_s21 = scalar_lea.hbm %s1979_s9, 1024 }
  0x22   : > { %p1625_p6 = scmp.ne.s32.totalorder %s1979_s9, %s1624_s21  ;;  %p1631_p8 = scmp.lt.u32.totalorder %s1624_s21, %s1979_s9 }
  0x24   : > { %p1627_p2 = pnand %p1625_p6, %p1598_p7 }
  0x26   : > { %p1628_p3 = pneg %p1627_p2 }
  0x28   : > { %p1633_p9 = pnand %p1631_p8, %p1628_p3 }
  0x2a   : > { %1636 = shalt.err (!%p1633_p9)
}
  0x2b   : > { %s1637_s28 = scalar_lea.vmem %s1768_s15, 1024  ;;  %p1645_p13 = scmp.lt.s32.totalorder %s1768_s15, %s1768_s15 }
  0x2c   : > { %p1638_p10 = scmp.ne.s32.totalorder %s1768_s15, %s1637_s28  ;;  %p1646_p0 = scmp.lt.s32.totalorder %s1637_s28, %s1637_s28 }
  0x2e   : > { %p1640_p11 = pnand %p1638_p10, %p1598_p7  ;;  %p1647_p1 = por %p1646_p0, %p1645_p13 }
  0x30   : > { %p1641_p12 = pneg %p1640_p11 }
  0x32   : > { %p1648_p4 = pnand %p1647_p1, %p1641_p12 }
  0x34   : > { %1651 = shalt.err (!%p1648_p4)
}
  0x35   : > { %1538 = dma.hbm_to_vmem [thread:$0]  (!%p1764_p5), %s1979_s9, 1024, %s1768_s15, [#allocation5], %s1670_s27, %s1670_s27, %s1671_s14  }
  0x36   : > { %p1991_p6 = scmp.ne.s32.totalorder %s1988_s29, 0 }
  0x37   : > { %p1992_p2 = scmp.ne.s32.totalorder (!%p1991_p6), %s1989_s30, 0 }
  0x38   : > { %414 = sbr.rel (%p1991_p6) target bundleno = 1419 (0x58b), region = 72 }
  0x3f   : > { %1657 = dma.done.wait (%p1992_p2), [#allocation3], 1024  }
  0x40   : > { %1659 = vsyncadd (%p1992_p2), [#allocation3], 4294966272 }
  0x41   : > { %1661 = dma.done.wait (%p1992_p2), [#allocation5], 1024  }
  0x42   : > { %1663 = vsyncadd (%p1992_p2), [#allocation5], 4294966272  ;;  %s1993_s16 = sadd.s32 4294967295, %s1666_s25   ;;  %v1555_v0 = vld [vmem:[%s1971_s1] sm:$0xff]   ;;  %vm496_vm0 = vcmask 130048   ;;  %v1557_v8 = vld [vmem:[%s1973_s3 + $0x8] sm:$0xff]  }
  0x43   : > { %s1310_s18 = sshll.u32 %s1993_s16, 2  ;;  %1418 = vmatprep.subr.bf16.mxu0 %v1555_v0  ;;  %v1556_v7 = vld [vmem:[%s1973_s3] sm:$0xff]   ;;  %v1558_v9 = vld [vmem:[%s1973_s3 + $0x10] sm:$0xff]   ;;  %v1559_v10 = vld [vmem:[%s1973_s3 + $0x18] sm:$0xff]   ;;  %vm1218_vm1 = vcmask 64512  }
  0x44   : > { %p463_p7 = scmp.lt.s32.totalorder %s1310_s18, 7  ;;  %1419 = vmatpush3.bf16.msra.mxu0 %v1555_v0  ;;  %1424 = vmatprep.subr.bf16.mxu1 %v1556_v7  ;;  %v1560_v11 = vld [vmem:[%s1973_s3 + $0x20] sm:$0xff]   ;;  %v1561_v12 = vld [vmem:[%s1973_s3 + $0x28] sm:$0xff]   ;;  %v1562_v13 = vld [vmem:[%s1973_s3 + $0x30] sm:$0xff]  }
  0x45   : > { %1425 = vmatpush3.bf16.msra.mxu1 %v1556_v7  ;;  %v1563_v14 = vld [vmem:[%s1973_s3 + $0x38] sm:$0xff]   ;;  %v1564_v15 = vld [vmem:[%s1975_s5] sm:$0xff]   ;;  %v1565_v16 = vld [vmem:[%s1975_s5 + $0x8] sm:$0xff]  }
  0x46   : > { %s1995_s18 = smov (!%p463_p7, %s1310_s18), 7  ;;  %1426 = vmatprep.subr.bf16.mxu1 %v1557_v8  ;;  %1444 = vmatprep.subr.bf16.mxu0 %v1564_v15  ;;  %v1566_v17 = vld [vmem:[%s1975_s5 + $0x10] sm:$0xff]   ;;  %v1567_v18 = vld [vmem:[%s1975_s5 + $0x18] sm:$0xff]   ;;  %v1568_v19 = vld [vmem:[%s1975_s5 + $0x20] sm:$0xff]  }
  0x47   : > { %s1311_s29 = sshll.u32 %s1995_s18, 3  ;;  %v1314_v20 = vld [vmem:[%s1972_s2] ss:$0 sm:$0xff]  ;;  %v1569_v39 = vld [vmem:[%s1975_s5 + $0x28] sm:$0xff]   ;;  %v1570_v40 = vld [vmem:[%s1975_s5 + $0x30] sm:$0xff]  }
  0x48   : > { %s466_s14 = scalar_lea.vmem %s1970_s0, %s1311_s29  ;;  %v1571_v41 = vld [vmem:[%s1975_s5 + $0x38] sm:$0xff]   ;;  %v1572_v42 = vld [vmem:[#allocation2] sm:$0xff]   ;;  %v1573_v43 = vld [vmem:[#allocation2 + $0x8] sm:$0xff]   ;;  %s472_s26 = scalar_lea.vmem %s1983_s13, %s1311_s29 }
  0x49   : > { %v475_v1 = vld [vmem:[%s466_s14] sm:$0xff]  ;;  %v476_v2 = vld [vmem:[%s466_s14 + $0x8] sm:$0xff]  ;;  %v477_v3 = vld [vmem:[%s466_s14 + $0x10] sm:$0xff]  ;;  %1427 = vmatpush3.bf16.msra.mxu1 %v1557_v8 }
  0x4a   : > { %v479_v4 = vpack.c.bf16 %v476_v2, %v475_v1  ;;  %v478_v5 = vld [vmem:[%s466_s14 + $0x18] sm:$0xff]  ;;  %1428 = vmatprep.subr.bf16.mxu1 %v1558_v9  ;;  %v1574_v44 = vld [vmem:[#allocation2 + $0x10] sm:$0xff]   ;;  %v1576_v46 = vld [vmem:[#allocation2 + $0x20] sm:$0xff]  }
  0x4b   : > { %v480_v6 = vpack.c.bf16 %v478_v5, %v477_v3  ;;  %v1575_v45 = vld [vmem:[#allocation2 + $0x18] sm:$0xff]   ;;  %v1318_v47 = vld [vmem:[%s1974_s4] ss:$0 sm:$0xff]  ;;  %v1577_v2 = vld [vmem:[#allocation2 + $0x28] sm:$0xff]  }
  0x4c   : > { %1420 = vmatprep.mubr.msk.bf16.mxu0 %vm496_vm0, %v479_v4  ;;  %v1578_v3 = vld [vmem:[#allocation2 + $0x30] sm:$0xff]   ;;  %v1579_v4 = vld [vmem:[#allocation2 + $0x38] sm:$0xff]   ;;  %v1580_v5 = vld [vmem:[#allocation4] sm:$0xff]  }
  0x4d   : > { %1421 = vmatmul.mubr.msk.bf16.vlgmr.msra.gmra.mrb[0].mxu0 %vm496_vm0, %v480_v6  ;;  %1429 = vmatpush3.bf16.msra.mxu1 %v1558_v9  ;;  %v1581_v6 = vld [vmem:[#allocation4 + $0x8] sm:$0xff]   ;;  %v1582_v7 = vld [vmem:[#allocation4 + $0x10] sm:$0xff]   ;;  %v1583_v8 = vld [vmem:[#allocation4 + $0x18] sm:$0xff]  }
  0x4e   : > { %1430 = vmatprep.subr.bf16.mxu1 %v1559_v10  ;;  %1445 = vmatpush3.bf16.msra.mxu0 %v1564_v15  ;;  %v1584_v9 = vld [vmem:[#allocation4 + $0x20] sm:$0xff]  }
  0x4f   : > { %1446 = vmatprep.subr.bf16.mxu0 %v1565_v16 }
  0x51   : > { %1431 = vmatpush3.bf16.msra.mxu1 %v1559_v10  ;;  %v1327_v10 = vld [vmem:[%s1976_s6] ss:$0 sm:$0xff] }
  0x52   : > { %1432 = vmatprep.subr.bf16.mxu1 %v1560_v11  ;;  %1447 = vmatpush3.bf16.msra.mxu0 %v1565_v16 }
  0x53   : > { %1448 = vmatprep.subr.bf16.mxu0 %v1566_v17 }
  0x55   : > { %1433 = vmatpush3.bf16.msra.mxu1 %v1560_v11 }
  0x56   : > { %1434 = vmatprep.subr.bf16.mxu1 %v1561_v12  ;;  %1449 = vmatpush3.bf16.msra.mxu0 %v1566_v17 }
  0x57   : > { %1450 = vmatprep.subr.bf16.mxu0 %v1567_v18 }
  0x59   : > { %1435 = vmatpush3.bf16.msra.mxu1 %v1561_v12 }
  0x5a   : > { %1436 = vmatprep.subr.bf16.mxu1 %v1562_v13  ;;  %1451 = vmatpush3.bf16.msra.mxu0 %v1567_v18 }
  0x5b   : > { %1452 = vmatprep.subr.bf16.mxu0 %v1568_v19 }
  0x5d   : > { %1437 = vmatpush3.bf16.msra.mxu1 %v1562_v13 }
  0x5e   : > { %1438 = vmatprep.subr.bf16.mxu1 %v1563_v14  ;;  %1453 = vmatpush3.bf16.msra.mxu0 %v1568_v19 }
  0x5f   : > { %1454 = vmatprep.subr.bf16.mxu0 %v1569_v39 }
  0x61   : > { %1439 = vmatpush3.bf16.msra.mxu1 %v1563_v14 }
  0x62   : > { %1455 = vmatpush3.bf16.msra.mxu0 %v1569_v39  ;;  %1464 = vmatprep.subr.bf16.mxu1 %v1572_v42  ;;  %v1587_v39 = vld [vmem:[#allocation4 + $0x38] sm:$0xff]  }
  0x63   : > { %1456 = vmatprep.subr.bf16.mxu0 %v1570_v40 }
  0x66   : > { %1457 = vmatpush3.bf16.msra.mxu0 %v1570_v40  ;;  %v1588_v40 = vld [vmem:[%s1981_s11] sm:$0xff]  }
  0x67   : > { %1458 = vmatprep.subr.bf16.mxu0 %v1571_v41 }
  0x6a   : > { %1459 = vmatpush3.bf16.msra.mxu0 %v1571_v41  ;;  %v1589_v41 = vld [vmem:[%s1981_s11 + $0x8] sm:$0xff]  }
  0x6b   : > { %1484 = vmatprep.subr.bf16.mxu0 %v1580_v5 }
 0x120   : > { %v1422_v21 = vpop.f32.mrb[0].mxu0 }
 0x121   : > { %v546_v22 = vadd.f32 %v1422_v21, %v1314_v20  ;;  %v537_v23 = vpop.f32.mrb[1].mxu0 }
 0x122   : > { %v538_v24 = vadd.f32 %v1314_v20, %v537_v23  ;;  %v1423_v25 = vpop.f32.mrb[2].mxu0 }
 0x123   : > { %v554_v26 = vmul.f32 0.01, %v546_v22  ;;  %v549_v27 = vadd.f32 %v1423_v25, %v1314_v20  ;;  %v540_v28 = vpop.f32.mrb[3].mxu0 }
 0x124   : > { %v552_v29 = vmul.f32 0.01, %v538_v24  ;;  %v541_v30 = vadd.f32 %v1314_v20, %v540_v28 }
 0x125   : > { %v555_v31 = vmul.f32 0.01, %v549_v27  ;;  %v1882_v33 = vmax.f32 %v546_v22, %v554_v26 }
 0x126   : > { %v553_v32 = vmul.f32 0.01, %v541_v30  ;;  %v1886_v35 = vmax.f32 %v538_v24, %v552_v29 }
 0x127   : > { %v1884_v34 = vmax.f32 %v549_v27, %v555_v31  ;;  %v814_v13 = vmul.f32 0.1, %v1882_v33 }
 0x128   : > { %v1888_v36 = vmax.f32 %v541_v30, %v553_v32  ;;  %v812_v15 = vmul.f32 0.1, %v1886_v35 }
 0x129   : > { %v561_v37 = vpack.c.bf16 %v1884_v34, %v1882_v33  ;;  %v815_v20 = vmul.f32 0.1, %v1884_v34 }
 0x12a   : > { %v560_v38 = vpack.c.bf16 %v1888_v36, %v1886_v35  ;;  %v813_v22 = vmul.f32 0.1, %v1888_v36 }
 0x12c   : > { %1440 = vmatprep.mubr.bf16.mxu1 %v560_v38  ;;  %v1586_v38 = vld [vmem:[#allocation4 + $0x30] sm:$0xff]  }
 0x12d   : > { %1441 = vmatmul.mubr.bf16.vlgmr.msra.gmra.mrb[0].mxu1 %v561_v37  ;;  %v1585_v37 = vld [vmem:[#allocation4 + $0x28] sm:$0xff]  }
 0x12e   : > { %1465 = vmatpush3.bf16.msra.mxu1 %v1572_v42  ;;  %v1590_v42 = vld [vmem:[%s1981_s11 + $0x10] sm:$0xff]  }
 0x12f   : > { %1466 = vmatprep.subr.bf16.mxu1 %v1573_v43 }
 0x132   : > { %1467 = vmatpush3.bf16.msra.mxu1 %v1573_v43  ;;  %v1591_v43 = vld [vmem:[%s1981_s11 + $0x18] sm:$0xff]  }
 0x133   : > { %1468 = vmatprep.subr.bf16.mxu1 %v1574_v44 }
 0x136   : > { %1469 = vmatpush3.bf16.msra.mxu1 %v1574_v44  ;;  %v1592_v44 = vld [vmem:[%s1981_s11 + $0x20] sm:$0xff]  }
 0x137   : > { %1470 = vmatprep.subr.bf16.mxu1 %v1575_v45 }
 0x13a   : > { %1471 = vmatpush3.bf16.msra.mxu1 %v1575_v45  ;;  %v1336_v45 = vld [vmem:[%s1978_s8] ss:$0 sm:$0xff] }
 0x13b   : > { %1472 = vmatprep.subr.bf16.mxu1 %v1576_v46 }
 0x13e   : > { %1473 = vmatpush3.bf16.msra.mxu1 %v1576_v46 }
 0x13f   : > { %1474 = vmatprep.subr.bf16.mxu1 %v1577_v2 }
 0x142   : > { %1475 = vmatpush3.bf16.msra.mxu1 %v1577_v2  ;;  %v1595_v2 = vld [vmem:[%s1981_s11 + $0x38] sm:$0xff]  }
 0x143   : > { %1476 = vmatprep.subr.bf16.mxu1 %v1578_v3 }
 0x146   : > { %1477 = vmatpush3.bf16.msra.mxu1 %v1578_v3  ;;  %v1345_v3 = vld [vmem:[%s1980_s10] ss:$0 sm:$0xff] }
 0x147   : > { %1478 = vmatprep.subr.bf16.mxu1 %v1579_v4 }
 0x14a   : > { %1479 = vmatpush3.bf16.msra.mxu1 %v1579_v4 }
 0x14b   : > { %1504 = vmatprep.subr.bf16.mxu1 %v1588_v40 }
 0x200   : > { %v1442_v48 = vpop.f32.mrb[0].mxu1 }
 0x201   : > { %v676_v49 = vadd.f32 %v1442_v48, %v1318_v47  ;;  %v667_v50 = vpop.f32.mrb[1].mxu1 }
 0x202   : > { %v668_v51 = vadd.f32 %v1318_v47, %v667_v50  ;;  %v1443_v52 = vpop.f32.mrb[2].mxu1 }
 0x203   : > { %v684_v53 = vmul.f32 0.01, %v676_v49  ;;  %v679_v54 = vadd.f32 %v1443_v52, %v1318_v47  ;;  %v670_v55 = vpop.f32.mrb[3].mxu1 }
 0x204   : > { %v682_v56 = vmul.f32 0.01, %v668_v51  ;;  %v671_v57 = vadd.f32 %v1318_v47, %v670_v55 }
 0x205   : > { %v685_v58 = vmul.f32 0.01, %v679_v54  ;;  %v688_v60 = vmax.f32 %v676_v49, %v684_v53 }
 0x206   : > { %v683_v59 = vmul.f32 0.01, %v671_v57  ;;  %v686_v62 = vmax.f32 %v668_v51, %v682_v56 }
 0x207   : > { %v689_v61 = vmax.f32 %v679_v54, %v685_v58 }
 0x208   : > { %v687_v63 = vmax.f32 %v671_v57, %v683_v59 }
 0x209   : > { %v691_v0 = vpack.c.bf16 %v689_v61, %v688_v60 }
 0x20a   : > { %v690_v1 = vpack.c.bf16 %v687_v63, %v686_v62 }
 0x20c   : > { %1460 = vmatprep.mubr.bf16.mxu0 %v690_v1  ;;  %v1594_v1 = vld [vmem:[%s1981_s11 + $0x30] sm:$0xff]  }
 0x20d   : > { %1461 = vmatmul.mubr.bf16.vlgmr.msra.gmra.mrb[4].mxu0 %v691_v0  ;;  %v1593_v0 = vld [vmem:[%s1981_s11 + $0x28] sm:$0xff]  }
 0x20e   : > { %1485 = vmatpush3.bf16.msra.mxu0 %v1580_v5 }
 0x20f   : > { %1486 = vmatprep.subr.bf16.mxu0 %v1581_v6 }
 0x212   : > { %1487 = vmatpush3.bf16.msra.mxu0 %v1581_v6 }
 0x213   : > { %1488 = vmatprep.subr.bf16.mxu0 %v1582_v7 }
 0x216   : > { %1489 = vmatpush3.bf16.msra.mxu0 %v1582_v7 }
 0x217   : > { %1490 = vmatprep.subr.bf16.mxu0 %v1583_v8 }
 0x21a   : > { %1491 = vmatpush3.bf16.msra.mxu0 %v1583_v8 }
 0x21b   : > { %1492 = vmatprep.subr.bf16.mxu0 %v1584_v9 }
 0x21e   : > { %1493 = vmatpush3.bf16.msra.mxu0 %v1584_v9 }
 0x21f   : > { %1494 = vmatprep.subr.bf16.mxu0 %v1585_v37 }
 0x222   : > { %1495 = vmatpush3.bf16.msra.mxu0 %v1585_v37 }
 0x223   : > { %1496 = vmatprep.subr.bf16.mxu0 %v1586_v38 }
 0x226   : > { %1497 = vmatpush3.bf16.msra.mxu0 %v1586_v38 }
 0x227   : > { %1498 = vmatprep.subr.bf16.mxu0 %v1587_v39 }
 0x22a   : > { %1499 = vmatpush3.bf16.msra.mxu0 %v1587_v39 }
 0x2e0   : > { %v1462_v11 = vpop.f32.mrb[4].mxu0 }
 0x2e1   : > { %v806_v12 = vadd.f32 %v1462_v11, %v1327_v10  ;;  %v797_v14 = vpop.f32.mrb[5].mxu0 }
 0x2e2   : > { %v798_v16 = vadd.f32 %v1327_v10, %v797_v14  ;;  %v1463_v17 = vpop.f32.mrb[6].mxu0 }
 0x2e3   : > { %v818_v18 = vadd.f32 %v814_v13, %v806_v12  ;;  %v809_v19 = vadd.f32 %v1463_v17, %v1327_v10  ;;  %v800_v21 = vpop.f32.mrb[7].mxu0 }
 0x2e4   : > { %v816_v23 = vadd.f32 %v812_v15, %v798_v16  ;;  %v801_v24 = vadd.f32 %v1327_v10, %v800_v21 }
 0x2e5   : > { %v822_v25 = vmul.f32 0.01, %v818_v18  ;;  %v819_v26 = vadd.f32 %v815_v20, %v809_v19 }
 0x2e6   : > { %v820_v27 = vmul.f32 0.01, %v816_v23  ;;  %v817_v28 = vadd.f32 %v813_v22, %v801_v24 }
 0x2e7   : > { %v823_v29 = vmul.f32 0.01, %v819_v26  ;;  %v1913_v31 = vmax.f32 %v818_v18, %v822_v25 }
 0x2e8   : > { %v821_v30 = vmul.f32 0.01, %v817_v28  ;;  %v1917_v33 = vmax.f32 %v816_v23, %v820_v27 }
 0x2e9   : > { %v1915_v32 = vmax.f32 %v819_v26, %v823_v29  ;;  %v1082_v6 = vmul.f32 0.1, %v1913_v31 }
 0x2ea   : > { %v1919_v35 = vmax.f32 %v817_v28, %v821_v30  ;;  %v1080_v9 = vmul.f32 0.1, %v1917_v33  ;;  %v1354_v30 = vld [vmem:[%s1982_s12] ss:$0 sm:$0xff] }
 0x2eb   : > { %v829_v34 = vpack.c.bf16 %v1915_v32, %v1913_v31  ;;  %v1083_v13 = vmul.f32 0.1, %v1915_v32 }
 0x2ec   : > { %v828_v36 = vpack.c.bf16 %v1919_v35, %v1917_v33  ;;  %v1081_v17 = vmul.f32 0.1, %v1919_v35 }
 0x2ee   : > { %1480 = vmatprep.mubr.bf16.mxu1 %v828_v36 }
 0x2ef   : > { %1481 = vmatmul.mubr.bf16.vlgmr.msra.gmra.mrb[4].mxu1 %v829_v34 }
 0x2f0   : > { %1505 = vmatpush3.bf16.msra.mxu1 %v1588_v40 }
 0x2f1   : > { %1506 = vmatprep.subr.bf16.mxu1 %v1589_v41 }
 0x2f4   : > { %1507 = vmatpush3.bf16.msra.mxu1 %v1589_v41 }
 0x2f5   : > { %1508 = vmatprep.subr.bf16.mxu1 %v1590_v42 }
 0x2f8   : > { %1509 = vmatpush3.bf16.msra.mxu1 %v1590_v42 }
 0x2f9   : > { %1510 = vmatprep.subr.bf16.mxu1 %v1591_v43 }
 0x2fc   : > { %1511 = vmatpush3.bf16.msra.mxu1 %v1591_v43 }
 0x2fd   : > { %1512 = vmatprep.subr.bf16.mxu1 %v1592_v44 }
 0x300   : > { %1513 = vmatpush3.bf16.msra.mxu1 %v1592_v44 }
 0x301   : > { %1514 = vmatprep.subr.bf16.mxu1 %v1593_v0 }
 0x304   : > { %1515 = vmatpush3.bf16.msra.mxu1 %v1593_v0 }
 0x305   : > { %1516 = vmatprep.subr.bf16.mxu1 %v1594_v1 }
 0x308   : > { %1517 = vmatpush3.bf16.msra.mxu1 %v1594_v1 }
 0x309   : > { %1518 = vmatprep.subr.bf16.mxu1 %v1595_v2 }
 0x30c   : > { %1519 = vmatpush3.bf16.msra.mxu1 %v1595_v2 }
 0x3c2   : > { %v1482_v46 = vpop.f32.mrb[4].mxu1 }
 0x3c3   : > { %v944_v47 = vadd.f32 %v1482_v46, %v1336_v45  ;;  %v935_v48 = vpop.f32.mrb[5].mxu1 }
 0x3c4   : > { %v936_v49 = vadd.f32 %v1336_v45, %v935_v48  ;;  %v1483_v50 = vpop.f32.mrb[6].mxu1 }
 0x3c5   : > { %v952_v51 = vmul.f32 0.01, %v944_v47  ;;  %v947_v52 = vadd.f32 %v1483_v50, %v1336_v45  ;;  %v938_v53 = vpop.f32.mrb[7].mxu1 }
 0x3c6   : > { %v950_v54 = vmul.f32 0.01, %v936_v49  ;;  %v939_v55 = vadd.f32 %v1336_v45, %v938_v53 }
 0x3c7   : > { %v953_v56 = vmul.f32 0.01, %v947_v52  ;;  %v956_v58 = vmax.f32 %v944_v47, %v952_v51 }
 0x3c8   : > { %v951_v57 = vmul.f32 0.01, %v939_v55  ;;  %v954_v60 = vmax.f32 %v936_v49, %v950_v54 }
 0x3c9   : > { %v957_v59 = vmax.f32 %v947_v52, %v953_v56 }
 0x3ca   : > { %v955_v61 = vmax.f32 %v939_v55, %v951_v57 }
 0x3cb   : > { %v959_v62 = vpack.c.bf16 %v957_v59, %v956_v58 }
 0x3cc   : > { %v958_v63 = vpack.c.bf16 %v955_v61, %v954_v60 }
 0x3ce   : > { %1500 = vmatprep.mubr.bf16.mxu0 %v958_v63 }
 0x3cf   : > { %1501 = vmatmul.mubr.bf16.vlgmr.msra.gmra.mrb[8].mxu0 %v959_v62 }
 0x4a2   : > { %v1502_v4 = vpop.f32.mrb[8].mxu0 }
 0x4a3   : > { %v1074_v5 = vadd.f32 %v1502_v4, %v1345_v3  ;;  %v1065_v7 = vpop.f32.mrb[9].mxu0 }
 0x4a4   : > { %v1066_v8 = vadd.f32 %v1345_v3, %v1065_v7  ;;  %v1503_v10 = vpop.f32.mrb[10].mxu0 }
 0x4a5   : > { %v1086_v11 = vadd.f32 %v1082_v6, %v1074_v5  ;;  %v1077_v12 = vadd.f32 %v1503_v10, %v1345_v3  ;;  %v1068_v14 = vpop.f32.mrb[11].mxu0 }
 0x4a6   : > { %v1084_v15 = vadd.f32 %v1080_v9, %v1066_v8  ;;  %v1069_v16 = vadd.f32 %v1345_v3, %v1068_v14 }
 0x4a7   : > { %v1090_v18 = vmul.f32 0.01, %v1086_v11  ;;  %v1087_v19 = vadd.f32 %v1083_v13, %v1077_v12 }
 0x4a8   : > { %v1088_v20 = vmul.f32 0.01, %v1084_v15  ;;  %v1085_v21 = vadd.f32 %v1081_v17, %v1069_v16 }
 0x4a9   : > { %v1091_v22 = vmul.f32 0.01, %v1087_v19  ;;  %v1094_v24 = vmax.f32 %v1086_v11, %v1090_v18 }
 0x4aa   : > { %v1089_v23 = vmul.f32 0.01, %v1085_v21  ;;  %v1092_v26 = vmax.f32 %v1084_v15, %v1088_v20 }
 0x4ab   : > { %v1095_v25 = vmax.f32 %v1087_v19, %v1091_v22 }
 0x4ac   : > { %v1093_v27 = vmax.f32 %v1085_v21, %v1089_v23 }
 0x4ad   : > { %v1097_v28 = vpack.c.bf16 %v1095_v25, %v1094_v24 }
 0x4ae   : > { %v1096_v29 = vpack.c.bf16 %v1093_v27, %v1092_v26 }
 0x4b0   : > { %1520 = vmatprep.mubr.bf16.mxu1 %v1096_v29 }
 0x4b1   : > { %1521 = vmatmul.mubr.bf16.vlgmr.msra.gmra.mrb[8].mxu1 %v1097_v28 }
 0x584   : > { %v1522_v31 = vpop.f32.mrb[8].mxu1 }
 0x585   : > { %v1203_v32 = vpop.f32.mrb[9].mxu1  ;;  %v1212_v37 = vadd.f32 %v1522_v31, %v1354_v30 }
 0x586   : > { %v1204_v33 = vadd.f32 %v1354_v30, %v1203_v32  ;;  %v1523_v35 = vpop.f32.mrb[10].mxu1 }
 0x587   : > { %v1206_v34 = vpop.f32.mrb[11].mxu1  ;;  %v1215_v38 = vadd.f32 %v1523_v35, %v1354_v30  ;;  %1221 = vst.msk [vmem:[%s472_s26 + $0x10] sm:$0xff] %vm1218_vm1, %v1212_v37 }
 0x588   : > { %1219 = vst.msk [vmem:[%s472_s26] sm:$0xff] %vm1218_vm1, %v1204_v33  ;;  %v1207_v36 = vadd.f32 %v1354_v30, %v1206_v34 }
 0x589   : > { %1222 = vst.msk [vmem:[%s472_s26 + $0x18] sm:$0xff] %vm1218_vm1, %v1215_v38 }
 0x58a   : > { %1220 = vst.msk [vmem:[%s472_s26 + $0x8] sm:$0xff] %vm1218_vm1, %v1207_v36 }
 0x58b PF: > { %s25_s25 = sadd.s32 1, %s1666_s25  }
 0x58c   : > { %p22_p5 = scmp.ge.s32.totalorder %s25_s25, 4  }
 0x58e   :  { %24 = sbr.rel (!%p22_p5) target bundleno = 2 (0x2), region = 111 }
 0x595   :  { %1245 = vsyncpa [#allocation3], 1 }
 0x596   :  { %1247 = vsyncpa [#allocation3 + $0x1], 1 }
 0x597   :  { %1248 = vsyncpa [#allocation5], 1 }

// kernel: tpu_custom_call.1
= control target key start
LH: loop header
LB: loop body
LE: loop exit
PB: predicated region body
PF: predicated region fallthrough
CT: control target
= control target key end

     0   :  { %18 = vsyncpa [#allocation3], 0  ;;  %s1970_s0 = inlined_call_operand.vmem [shape: f32[64,16], index: 0, kind: input, shape index: {}]   ;;  %s1971_s1 = inlined_call_operand.vmem [shape: bf16[16,128], index: 1, kind: input, shape index: {}]   ;;  %s1972_s2 = inlined_call_operand.vmem [shape: f32[1,128], index: 2, kind: input, shape index: {}]   ;;  %s1973_s3 = inlined_call_operand.vmem [shape: bf16[128,128], index: 3, kind: input, shape index: {}]   ;;  %s1974_s4 = inlined_call_operand.vmem [shape: f32[1,128], index: 4, kind: input, shape index: {}]   ;;  %s1975_s5 = inlined_call_operand.vmem [shape: bf16[128,128], index: 5, kind: input, shape index: {}]   ;;  %s1976_s6 = inlined_call_operand.vmem [shape: f32[1,128], index: 6, kind: input, shape index: {}]   ;;  %s1977_s7 = inlined_call_operand.hbm [shape: bf16[128,128], index: 7, kind: input, shape index: {}]   ;;  %s1978_s8 = inlined_call_operand.vmem [shape: f32[1,128], index: 8, kind: input, shape index: {}]   ;;  %s1979_s9 = inlined_call_operand.hbm [shape: bf16[128,128], index: 9, kind: input, shape index: {}]   ;;  %s1980_s10 = inlined_call_operand.vmem [shape: f32[1,128], index: 10, kind: input, shape index: {}]   ;;  %s1981_s11 = inlined_call_operand.vmem [shape: bf16[128,8], index: 11, kind: input, shape index: {}]   ;;  %s1982_s12 = inlined_call_operand.vmem [shape: f32[1,8], index: 12, kind: input, shape index: {}]   ;;  %s1983_s13 = inlined_call_operand.vmem [shape: f32[64,8], index: 13, kind: output, shape index: {}]  }
   0x1   :  { %19 = vsyncpa [#allocation5], 0  ;;  %s1742_s25 = smov 0  }
   0x2 LB: > { %s1987_s26 = sadd.s32 4294967295, %s1666_s25   ;;  %p1303_p0 = scmp.ge.s32.totalorder %s1666_s25, 1  ;;  %s1666_s25 = sphi %s1742_s25, %s25_s25  }
   0x3   : > { %p334_p1 = scmp.lt.s32.totalorder %s1666_s25, 3  ;;  %s1668_s27 = smov [#allocation2]  }
   0x4   : > { %s364_s28 = sshll.u32 %s1668_s27, 4  ;;  %p1756_p3 = scmp.eq.s32.totalorder %s1987_s26, 0  ;;  %s365_s28 = int_to_ptr.vmem [resolvable:$true] %s364_s28 }
   0x5   : > { %p1750_p2 = pnand %p1303_p0, %p334_p1  ;;  %s1669_s14 = smov [#allocation4]  }
   0x6   : > { %s1989_s30 = scalar_select %p1756_p3, 1, 0 }
   0x7   : > { %s1988_s29 = scalar_select %p1750_p2, 1, 0 }
   0x8   : > { %p1532_p4 = pneg %p1750_p2  ;;  %s380_s15 = sshll.u32 %s1669_s14, 4  ;;  %s1768_s15 = int_to_ptr.vmem [resolvable:$true] %s380_s15 }
   0x9   : > { %s1596_s19 = scalar_lea.hbm %s1977_s7, 1024 }
   0xa   : > { %p1764_p5 = pnand %p1756_p3, %p1532_p4  ;;  %p1597_p6 = scmp.ne.s32.totalorder %s1977_s7, %s1596_s19 }
   0xb   : > { %p1603_p10 = scmp.lt.u32.totalorder %s1596_s19, %s1977_s7 }
   0xc   : > { %p1598_p7 = pneg %p1764_p5 }
   0xe   : > { %p1599_p8 = pnand %p1598_p7, %p1597_p6 }
  0x10   : > { %p1600_p9 = pneg %p1599_p8 }
  0x12   : > { %p1605_p11 = pnand %p1603_p10, %p1600_p9 }
  0x14   : > { %1608 = shalt.err (!%p1605_p11)
}
  0x15   : > { %s1609_s24 = scalar_lea.vmem %s365_s28, 1024  ;;  %p1617_p1 = scmp.lt.s32.totalorder %s365_s28, %s365_s28 }
  0x16   : > { %p1610_p12 = scmp.ne.s32.totalorder %s365_s28, %s1609_s24  ;;  %p1618_p4 = scmp.lt.s32.totalorder %s1609_s24, %s1609_s24 }
  0x18   : > { %p1612_p13 = pnand %p1610_p12, %p1598_p7  ;;  %p1619_p3 = por %p1618_p4, %p1617_p1 }
  0x1a   : > { %p1613_p0 = pneg %p1612_p13 }
  0x1c   : > { %p1620_p2 = pnand %p1619_p3, %p1613_p0 }
  0x1e   : > { %1623 = shalt.err (!%p1620_p2)
}
  0x1f   : > { %s1670_s27 = smov 64   ;;  %s1671_s14 = smov 4  }
  0x20   : > { %1535 = dma.hbm_to_vmem [thread:$0]  (!%p1764_p5), %s1977_s7, 1024, %s365_s28, [#allocation3], %s1670_s27, %s1670_s27, %s1671_s14  }
  0x21   : > { %s1624_s21 = scalar_lea.hbm %s1979_s9, 1024 }
  0x22   : > { %p1625_p6 = scmp.ne.s32.totalorder %s1979_s9, %s1624_s21  ;;  %p1631_p8 = scmp.lt.u32.totalorder %s1624_s21, %s1979_s9 }
  0x24   : > { %p1627_p2 = pnand %p1625_p6, %p1598_p7 }
  0x26   : > { %p1628_p3 = pneg %p1627_p2 }
  0x28   : > { %p1633_p9 = pnand %p1631_p8, %p1628_p3 }
  0x2a   : > { %1636 = shalt.err (!%p1633_p9)
}
  0x2b   : > { %s1637_s28 = scalar_lea.vmem %s1768_s15, 1024  ;;  %p1645_p13 = scmp.lt.s32.totalorder %s1768_s15, %s1768_s15 }
  0x2c   : > { %p1638_p10 = scmp.ne.s32.totalorder %s1768_s15, %s1637_s28  ;;  %p1646_p0 = scmp.lt.s32.totalorder %s1637_s28, %s1637_s28 }
  0x2e   : > { %p1640_p11 = pnand %p1638_p10, %p1598_p7  ;;  %p1647_p1 = por %p1646_p0, %p1645_p13 }
  0x30   : > { %p1641_p12 = pneg %p1640_p11 }
  0x32   : > { %p1648_p4 = pnand %p1647_p1, %p1641_p12 }
  0x34   : > { %1651 = shalt.err (!%p1648_p4)
}
  0x35   : > { %1538 = dma.hbm_to_vmem [thread:$0]  (!%p1764_p5), %s1979_s9, 1024, %s1768_s15, [#allocation5], %s1670_s27, %s1670_s27, %s1671_s14  }
  0x36   : > { %p1991_p6 = scmp.ne.s32.totalorder %s1988_s29, 0 }
  0x37   : > { %p1992_p2 = scmp.ne.s32.totalorder (!%p1991_p6), %s1989_s30, 0 }
  0x38   : > { %414 = sbr.rel (%p1991_p6) target bundleno = 1419 (0x58b), region = 72 }
  0x3f   : > { %1657 = dma.done.wait (%p1992_p2), [#allocation3], 1024  }
  0x40   : > { %1659 = vsyncadd (%p1992_p2), [#allocation3], 4294966272 }
  0x41   : > { %1661 = dma.done.wait (%p1992_p2), [#allocation5], 1024  }
  0x42   : > { %1663 = vsyncadd (%p1992_p2), [#allocation5], 4294966272  ;;  %s1993_s16 = sadd.s32 4294967295, %s1666_s25   ;;  %v1555_v0 = vld [vmem:[%s1971_s1] sm:$0xff]   ;;  %vm496_vm0 = vcmask 130048   ;;  %v1557_v8 = vld [vmem:[%s1973_s3 + $0x8] sm:$0xff]  }
  0x43   : > { %s1310_s18 = sshll.u32 %s1993_s16, 2  ;;  %1418 = vmatprep.subr.bf16.mxu0 %v1555_v0  ;;  %v1556_v7 = vld [vmem:[%s1973_s3] sm:$0xff]   ;;  %v1558_v9 = vld [vmem:[%s1973_s3 + $0x10] sm:$0xff]   ;;  %v1559_v10 = vld [vmem:[%s1973_s3 + $0x18] sm:$0xff]   ;;  %vm1218_vm1 = vcmask 64512  }
  0x44   : > { %p463_p7 = scmp.lt.s32.totalorder %s1310_s18, 7  ;;  %1419 = vmatpush3.bf16.msra.mxu0 %v1555_v0  ;;  %1424 = vmatprep.subr.bf16.mxu1 %v1556_v7  ;;  %v1560_v11 = vld [vmem:[%s1973_s3 + $0x20] sm:$0xff]   ;;  %v1561_v12 = vld [vmem:[%s1973_s3 + $0x28] sm:$0xff]   ;;  %v1562_v13 = vld [vmem:[%s1973_s3 + $0x30] sm:$0xff]  }
  0x45   : > { %1425 = vmatpush3.bf16.msra.mxu1 %v1556_v7  ;;  %v1563_v14 = vld [vmem:[%s1973_s3 + $0x38] sm:$0xff]   ;;  %v1564_v15 = vld [vmem:[%s1975_s5] sm:$0xff]   ;;  %v1565_v16 = vld [vmem:[%s1975_s5 + $0x8] sm:$0xff]  }
  0x46   : > { %s1995_s18 = smov (!%p463_p7, %s1310_s18), 7  ;;  %1426 = vmatprep.subr.bf16.mxu1 %v1557_v8  ;;  %1444 = vmatprep.subr.bf16.mxu0 %v1564_v15  ;;  %v1566_v17 = vld [vmem:[%s1975_s5 + $0x10] sm:$0xff]   ;;  %v1567_v18 = vld [vmem:[%s1975_s5 + $0x18] sm:$0xff]   ;;  %v1568_v19 = vld [vmem:[%s1975_s5 + $0x20] sm:$0xff]  }
  0x47   : > { %s1311_s29 = sshll.u32 %s1995_s18, 3  ;;  %v1314_v20 = vld [vmem:[%s1972_s2] ss:$0 sm:$0xff]  ;;  %v1569_v39 = vld [vmem:[%s1975_s5 + $0x28] sm:$0xff]   ;;  %v1570_v40 = vld [vmem:[%s1975_s5 + $0x30] sm:$0xff]  }
  0x48   : > { %s466_s14 = scalar_lea.vmem %s1970_s0, %s1311_s29  ;;  %v1571_v41 = vld [vmem:[%s1975_s5 + $0x38] sm:$0xff]   ;;  %v1572_v42 = vld [vmem:[#allocation2] sm:$0xff]   ;;  %v1573_v43 = vld [vmem:[#allocation2 + $0x8] sm:$0xff]   ;;  %s472_s26 = scalar_lea.vmem %s1983_s13, %s1311_s29 }
  0x49   : > { %v475_v1 = vld [vmem:[%s466_s14] sm:$0xff]  ;;  %v476_v2 = vld [vmem:[%s466_s14 + $0x8] sm:$0xff]  ;;  %v477_v3 = vld [vmem:[%s466_s14 + $0x10] sm:$0xff]  ;;  %1427 = vmatpush3.bf16.msra.mxu1 %v1557_v8 }
  0x4a   : > { %v479_v4 = vpack.c.bf16 %v476_v2, %v475_v1  ;;  %v478_v5 = vld [vmem:[%s466_s14 + $0x18] sm:$0xff]  ;;  %1428 = vmatprep.subr.bf16.mxu1 %v1558_v9  ;;  %v1574_v44 = vld [vmem:[#allocation2 + $0x10] sm:$0xff]   ;;  %v1576_v46 = vld [vmem:[#allocation2 + $0x20] sm:$0xff]  }
  0x4b   : > { %v480_v6 = vpack.c.bf16 %v478_v5, %v477_v3  ;;  %v1575_v45 = vld [vmem:[#allocation2 + $0x18] sm:$0xff]   ;;  %v1318_v47 = vld [vmem:[%s1974_s4] ss:$0 sm:$0xff]  ;;  %v1577_v2 = vld [vmem:[#allocation2 + $0x28] sm:$0xff]  }
  0x4c   : > { %1420 = vmatprep.mubr.msk.bf16.mxu0 %vm496_vm0, %v479_v4  ;;  %v1578_v3 = vld [vmem:[#allocation2 + $0x30] sm:$0xff]   ;;  %v1579_v4 = vld [vmem:[#allocation2 + $0x38] sm:$0xff]   ;;  %v1580_v5 = vld [vmem:[#allocation4] sm:$0xff]  }
  0x4d   : > { %1421 = vmatmul.mubr.msk.bf16.vlgmr.msra.gmra.mrb[0].mxu0 %vm496_vm0, %v480_v6  ;;  %1429 = vmatpush3.bf16.msra.mxu1 %v1558_v9  ;;  %v1581_v6 = vld [vmem:[#allocation4 + $0x8] sm:$0xff]   ;;  %v1582_v7 = vld [vmem:[#allocation4 + $0x10] sm:$0xff]   ;;  %v1583_v8 = vld [vmem:[#allocation4 + $0x18] sm:$0xff]  }
  0x4e   : > { %1430 = vmatprep.subr.bf16.mxu1 %v1559_v10  ;;  %1445 = vmatpush3.bf16.msra.mxu0 %v1564_v15  ;;  %v1584_v9 = vld [vmem:[#allocation4 + $0x20] sm:$0xff]  }
  0x4f   : > { %1446 = vmatprep.subr.bf16.mxu0 %v1565_v16 }
  0x51   : > { %1431 = vmatpush3.bf16.msra.mxu1 %v1559_v10  ;;  %v1327_v10 = vld [vmem:[%s1976_s6] ss:$0 sm:$0xff] }
  0x52   : > { %1432 = vmatprep.subr.bf16.mxu1 %v1560_v11  ;;  %1447 = vmatpush3.bf16.msra.mxu0 %v1565_v16 }
  0x53   : > { %1448 = vmatprep.subr.bf16.mxu0 %v1566_v17 }
  0x55   : > { %1433 = vmatpush3.bf16.msra.mxu1 %v1560_v11 }
  0x56   : > { %1434 = vmatprep.subr.bf16.mxu1 %v1561_v12  ;;  %1449 = vmatpush3.bf16.msra.mxu0 %v1566_v17 }
  0x57   : > { %1450 = vmatprep.subr.bf16.mxu0 %v1567_v18 }
  0x59   : > { %1435 = vmatpush3.bf16.msra.mxu1 %v1561_v12 }
  0x5a   : > { %1436 = vmatprep.subr.bf16.mxu1 %v1562_v13  ;;  %1451 = vmatpush3.bf16.msra.mxu0 %v1567_v18 }
  0x5b   : > { %1452 = vmatprep.subr.bf16.mxu0 %v1568_v19 }
  0x5d   : > { %1437 = vmatpush3.bf16.msra.mxu1 %v1562_v13 }
  0x5e   : > { %1438 = vmatprep.subr.bf16.mxu1 %v1563_v14  ;;  %1453 = vmatpush3.bf16.msra.mxu0 %v1568_v19 }
  0x5f   : > { %1454 = vmatprep.subr.bf16.mxu0 %v1569_v39 }
  0x61   : > { %1439 = vmatpush3.bf16.msra.mxu1 %v1563_v14 }
  0x62   : > { %1455 = vmatpush3.bf16.msra.mxu0 %v1569_v39  ;;  %1464 = vmatprep.subr.bf16.mxu1 %v1572_v42  ;;  %v1587_v39 = vld [vmem:[#allocation4 + $0x38] sm:$0xff]  }
  0x63   : > { %1456 = vmatprep.subr.bf16.mxu0 %v1570_v40 }
  0x66   : > { %1457 = vmatpush3.bf16.msra.mxu0 %v1570_v40  ;;  %v1588_v40 = vld [vmem:[%s1981_s11] sm:$0xff]  }
  0x67   : > { %1458 = vmatprep.subr.bf16.mxu0 %v1571_v41 }
  0x6a   : > { %1459 = vmatpush3.bf16.msra.mxu0 %v1571_v41  ;;  %v1589_v41 = vld [vmem:[%s1981_s11 + $0x8] sm:$0xff]  }
  0x6b   : > { %1484 = vmatprep.subr.bf16.mxu0 %v1580_v5 }
 0x120   : > { %v1422_v21 = vpop.f32.mrb[0].mxu0 }
 0x121   : > { %v546_v22 = vadd.f32 %v1422_v21, %v1314_v20  ;;  %v537_v23 = vpop.f32.mrb[1].mxu0 }
 0x122   : > { %v538_v24 = vadd.f32 %v1314_v20, %v537_v23  ;;  %v1423_v25 = vpop.f32.mrb[2].mxu0 }
 0x123   : > { %v554_v26 = vmul.f32 0.01, %v546_v22  ;;  %v549_v27 = vadd.f32 %v1423_v25, %v1314_v20  ;;  %v540_v28 = vpop.f32.mrb[3].mxu0 }
 0x124   : > { %v552_v29 = vmul.f32 0.01, %v538_v24  ;;  %v541_v30 = vadd.f32 %v1314_v20, %v540_v28 }
 0x125   : > { %v555_v31 = vmul.f32 0.01, %v549_v27  ;;  %v1882_v33 = vmax.f32 %v546_v22, %v554_v26 }
 0x126   : > { %v553_v32 = vmul.f32 0.01, %v541_v30  ;;  %v1886_v35 = vmax.f32 %v538_v24, %v552_v29 }
 0x127   : > { %v1884_v34 = vmax.f32 %v549_v27, %v555_v31  ;;  %v814_v13 = vmul.f32 0.1, %v1882_v33 }
 0x128   : > { %v1888_v36 = vmax.f32 %v541_v30, %v553_v32  ;;  %v812_v15 = vmul.f32 0.1, %v1886_v35 }
 0x129   : > { %v561_v37 = vpack.c.bf16 %v1884_v34, %v1882_v33  ;;  %v815_v20 = vmul.f32 0.1, %v1884_v34 }
 0x12a   : > { %v560_v38 = vpack.c.bf16 %v1888_v36, %v1886_v35  ;;  %v813_v22 = vmul.f32 0.1, %v1888_v36 }
 0x12c   : > { %1440 = vmatprep.mubr.bf16.mxu1 %v560_v38  ;;  %v1586_v38 = vld [vmem:[#allocation4 + $0x30] sm:$0xff]  }
 0x12d   : > { %1441 = vmatmul.mubr.bf16.vlgmr.msra.gmra.mrb[0].mxu1 %v561_v37  ;;  %v1585_v37 = vld [vmem:[#allocation4 + $0x28] sm:$0xff]  }
 0x12e   : > { %1465 = vmatpush3.bf16.msra.mxu1 %v1572_v42  ;;  %v1590_v42 = vld [vmem:[%s1981_s11 + $0x10] sm:$0xff]  }
 0x12f   : > { %1466 = vmatprep.subr.bf16.mxu1 %v1573_v43 }
 0x132   : > { %1467 = vmatpush3.bf16.msra.mxu1 %v1573_v43  ;;  %v1591_v43 = vld [vmem:[%s1981_s11 + $0x18] sm:$0xff]  }
 0x133   : > { %1468 = vmatprep.subr.bf16.mxu1 %v1574_v44 }
 0x136   : > { %1469 = vmatpush3.bf16.msra.mxu1 %v1574_v44  ;;  %v1592_v44 = vld [vmem:[%s1981_s11 + $0x20] sm:$0xff]  }
 0x137   : > { %1470 = vmatprep.subr.bf16.mxu1 %v1575_v45 }
 0x13a   : > { %1471 = vmatpush3.bf16.msra.mxu1 %v1575_v45  ;;  %v1336_v45 = vld [vmem:[%s1978_s8] ss:$0 sm:$0xff] }
 0x13b   : > { %1472 = vmatprep.subr.bf16.mxu1 %v1576_v46 }
 0x13e   : > { %1473 = vmatpush3.bf16.msra.mxu1 %v1576_v46 }
 0x13f   : > { %1474 = vmatprep.subr.bf16.mxu1 %v1577_v2 }
 0x142   : > { %1475 = vmatpush3.bf16.msra.mxu1 %v1577_v2  ;;  %v1595_v2 = vld [vmem:[%s1981_s11 + $0x38] sm:$0xff]  }
 0x143   : > { %1476 = vmatprep.subr.bf16.mxu1 %v1578_v3 }
 0x146   : > { %1477 = vmatpush3.bf16.msra.mxu1 %v1578_v3  ;;  %v1345_v3 = vld [vmem:[%s1980_s10] ss:$0 sm:$0xff] }
 0x147   : > { %1478 = vmatprep.subr.bf16.mxu1 %v1579_v4 }
 0x14a   : > { %1479 = vmatpush3.bf16.msra.mxu1 %v1579_v4 }
 0x14b   : > { %1504 = vmatprep.subr.bf16.mxu1 %v1588_v40 }
 0x200   : > { %v1442_v48 = vpop.f32.mrb[0].mxu1 }
 0x201   : > { %v676_v49 = vadd.f32 %v1442_v48, %v1318_v47  ;;  %v667_v50 = vpop.f32.mrb[1].mxu1 }
 0x202   : > { %v668_v51 = vadd.f32 %v1318_v47, %v667_v50  ;;  %v1443_v52 = vpop.f32.mrb[2].mxu1 }
 0x203   : > { %v684_v53 = vmul.f32 0.01, %v676_v49  ;;  %v679_v54 = vadd.f32 %v1443_v52, %v1318_v47  ;;  %v670_v55 = vpop.f32.mrb[3].mxu1 }
 0x204   : > { %v682_v56 = vmul.f32 0.01, %v668_v51  ;;  %v671_v57 = vadd.f32 %v1318_v47, %v670_v55 }
 0x205   : > { %v685_v58 = vmul.f32 0.01, %v679_v54  ;;  %v688_v60 = vmax.f32 %v676_v49, %v684_v53 }
 0x206   : > { %v683_v59 = vmul.f32 0.01, %v671_v57  ;;  %v686_v62 = vmax.f32 %v668_v51, %v682_v56 }
 0x207   : > { %v689_v61 = vmax.f32 %v679_v54, %v685_v58 }
 0x208   : > { %v687_v63 = vmax.f32 %v671_v57, %v683_v59 }
 0x209   : > { %v691_v0 = vpack.c.bf16 %v689_v61, %v688_v60 }
 0x20a   : > { %v690_v1 = vpack.c.bf16 %v687_v63, %v686_v62 }
 0x20c   : > { %1460 = vmatprep.mubr.bf16.mxu0 %v690_v1  ;;  %v1594_v1 = vld [vmem:[%s1981_s11 + $0x30] sm:$0xff]  }
 0x20d   : > { %1461 = vmatmul.mubr.bf16.vlgmr.msra.gmra.mrb[4].mxu0 %v691_v0  ;;  %v1593_v0 = vld [vmem:[%s1981_s11 + $0x28] sm:$0xff]  }
 0x20e   : > { %1485 = vmatpush3.bf16.msra.mxu0 %v1580_v5 }
 0x20f   : > { %1486 = vmatprep.subr.bf16.mxu0 %v1581_v6 }
 0x212   : > { %1487 = vmatpush3.bf16.msra.mxu0 %v1581_v6 }
 0x213   : > { %1488 = vmatprep.subr.bf16.mxu0 %v1582_v7 }
 0x216   : > { %1489 = vmatpush3.bf16.msra.mxu0 %v1582_v7 }
 0x217   : > { %1490 = vmatprep.subr.bf16.mxu0 %v1583_v8 }
 0x21a   : > { %1491 = vmatpush3.bf16.msra.mxu0 %v1583_v8 }
 0x21b   : > { %1492 = vmatprep.subr.bf16.mxu0 %v1584_v9 }
 0x21e   : > { %1493 = vmatpush3.bf16.msra.mxu0 %v1584_v9 }
 0x21f   : > { %1494 = vmatprep.subr.bf16.mxu0 %v1585_v37 }
 0x222   : > { %1495 = vmatpush3.bf16.msra.mxu0 %v1585_v37 }
 0x223   : > { %1496 = vmatprep.subr.bf16.mxu0 %v1586_v38 }
 0x226   : > { %1497 = vmatpush3.bf16.msra.mxu0 %v1586_v38 }
 0x227   : > { %1498 = vmatprep.subr.bf16.mxu0 %v1587_v39 }
 0x22a   : > { %1499 = vmatpush3.bf16.msra.mxu0 %v1587_v39 }
 0x2e0   : > { %v1462_v11 = vpop.f32.mrb[4].mxu0 }
 0x2e1   : > { %v806_v12 = vadd.f32 %v1462_v11, %v1327_v10  ;;  %v797_v14 = vpop.f32.mrb[5].mxu0 }
 0x2e2   : > { %v798_v16 = vadd.f32 %v1327_v10, %v797_v14  ;;  %v1463_v17 = vpop.f32.mrb[6].mxu0 }
 0x2e3   : > { %v818_v18 = vadd.f32 %v814_v13, %v806_v12  ;;  %v809_v19 = vadd.f32 %v1463_v17, %v1327_v10  ;;  %v800_v21 = vpop.f32.mrb[7].mxu0 }
 0x2e4   : > { %v816_v23 = vadd.f32 %v812_v15, %v798_v16  ;;  %v801_v24 = vadd.f32 %v1327_v10, %v800_v21 }
 0x2e5   : > { %v822_v25 = vmul.f32 0.01, %v818_v18  ;;  %v819_v26 = vadd.f32 %v815_v20, %v809_v19 }
 0x2e6   : > { %v820_v27 = vmul.f32 0.01, %v816_v23  ;;  %v817_v28 = vadd.f32 %v813_v22, %v801_v24 }
 0x2e7   : > { %v823_v29 = vmul.f32 0.01, %v819_v26  ;;  %v1913_v31 = vmax.f32 %v818_v18, %v822_v25 }
 0x2e8   : > { %v821_v30 = vmul.f32 0.01, %v817_v28  ;;  %v1917_v33 = vmax.f32 %v816_v23, %v820_v27 }
 0x2e9   : > { %v1915_v32 = vmax.f32 %v819_v26, %v823_v29  ;;  %v1082_v6 = vmul.f32 0.1, %v1913_v31 }
 0x2ea   : > { %v1919_v35 = vmax.f32 %v817_v28, %v821_v30  ;;  %v1080_v9 = vmul.f32 0.1, %v1917_v33  ;;  %v1354_v30 = vld [vmem:[%s1982_s12] ss:$0 sm:$0xff] }
 0x2eb   : > { %v829_v34 = vpack.c.bf16 %v1915_v32, %v1913_v31  ;;  %v1083_v13 = vmul.f32 0.1, %v1915_v32 }
 0x2ec   : > { %v828_v36 = vpack.c.bf16 %v1919_v35, %v1917_v33  ;;  %v1081_v17 = vmul.f32 0.1, %v1919_v35 }
 0x2ee   : > { %1480 = vmatprep.mubr.bf16.mxu1 %v828_v36 }
 0x2ef   : > { %1481 = vmatmul.mubr.bf16.vlgmr.msra.gmra.mrb[4].mxu1 %v829_v34 }
 0x2f0   : > { %1505 = vmatpush3.bf16.msra.mxu1 %v1588_v40 }
 0x2f1   : > { %1506 = vmatprep.subr.bf16.mxu1 %v1589_v41 }
 0x2f4   : > { %1507 = vmatpush3.bf16.msra.mxu1 %v1589_v41 }
 0x2f5   : > { %1508 = vmatprep.subr.bf16.mxu1 %v1590_v42 }
 0x2f8   : > { %1509 = vmatpush3.bf16.msra.mxu1 %v1590_v42 }
 0x2f9   : > { %1510 = vmatprep.subr.bf16.mxu1 %v1591_v43 }
 0x2fc   : > { %1511 = vmatpush3.bf16.msra.mxu1 %v1591_v43 }
 0x2fd   : > { %1512 = vmatprep.subr.bf16.mxu1 %v1592_v44 }
 0x300   : > { %1513 = vmatpush3.bf16.msra.mxu1 %v1592_v44 }
 0x301   : > { %1514 = vmatprep.subr.bf16.mxu1 %v1593_v0 }
 0x304   : > { %1515 = vmatpush3.bf16.msra.mxu1 %v1593_v0 }
 0x305   : > { %1516 = vmatprep.subr.bf16.mxu1 %v1594_v1 }
 0x308   : > { %1517 = vmatpush3.bf16.msra.mxu1 %v1594_v1 }
 0x309   : > { %1518 = vmatprep.subr.bf16.mxu1 %v1595_v2 }
 0x30c   : > { %1519 = vmatpush3.bf16.msra.mxu1 %v1595_v2 }
 0x3c2   : > { %v1482_v46 = vpop.f32.mrb[4].mxu1 }
 0x3c3   : > { %v944_v47 = vadd.f32 %v1482_v46, %v1336_v45  ;;  %v935_v48 = vpop.f32.mrb[5].mxu1 }
 0x3c4   : > { %v936_v49 = vadd.f32 %v1336_v45, %v935_v48  ;;  %v1483_v50 = vpop.f32.mrb[6].mxu1 }
 0x3c5   : > { %v952_v51 = vmul.f32 0.01, %v944_v47  ;;  %v947_v52 = vadd.f32 %v1483_v50, %v1336_v45  ;;  %v938_v53 = vpop.f32.mrb[7].mxu1 }
 0x3c6   : > { %v950_v54 = vmul.f32 0.01, %v936_v49  ;;  %v939_v55 = vadd.f32 %v1336_v45, %v938_v53 }
 0x3c7   : > { %v953_v56 = vmul.f32 0.01, %v947_v52  ;;  %v956_v58 = vmax.f32 %v944_v47, %v952_v51 }
 0x3c8   : > { %v951_v57 = vmul.f32 0.01, %v939_v55  ;;  %v954_v60 = vmax.f32 %v936_v49, %v950_v54 }
 0x3c9   : > { %v957_v59 = vmax.f32 %v947_v52, %v953_v56 }
 0x3ca   : > { %v955_v61 = vmax.f32 %v939_v55, %v951_v57 }
 0x3cb   : > { %v959_v62 = vpack.c.bf16 %v957_v59, %v956_v58 }
 0x3cc   : > { %v958_v63 = vpack.c.bf16 %v955_v61, %v954_v60 }
 0x3ce   : > { %1500 = vmatprep.mubr.bf16.mxu0 %v958_v63 }
 0x3cf   : > { %1501 = vmatmul.mubr.bf16.vlgmr.msra.gmra.mrb[8].mxu0 %v959_v62 }
 0x4a2   : > { %v1502_v4 = vpop.f32.mrb[8].mxu0 }
 0x4a3   : > { %v1074_v5 = vadd.f32 %v1502_v4, %v1345_v3  ;;  %v1065_v7 = vpop.f32.mrb[9].mxu0 }
 0x4a4   : > { %v1066_v8 = vadd.f32 %v1345_v3, %v1065_v7  ;;  %v1503_v10 = vpop.f32.mrb[10].mxu0 }
 0x4a5   : > { %v1086_v11 = vadd.f32 %v1082_v6, %v1074_v5  ;;  %v1077_v12 = vadd.f32 %v1503_v10, %v1345_v3  ;;  %v1068_v14 = vpop.f32.mrb[11].mxu0 }
 0x4a6   : > { %v1084_v15 = vadd.f32 %v1080_v9, %v1066_v8  ;;  %v1069_v16 = vadd.f32 %v1345_v3, %v1068_v14 }
 0x4a7   : > { %v1090_v18 = vmul.f32 0.01, %v1086_v11  ;;  %v1087_v19 = vadd.f32 %v1083_v13, %v1077_v12 }
 0x4a8   : > { %v1088_v20 = vmul.f32 0.01, %v1084_v15  ;;  %v1085_v21 = vadd.f32 %v1081_v17, %v1069_v16 }
 0x4a9   : > { %v1091_v22 = vmul.f32 0.01, %v1087_v19  ;;  %v1094_v24 = vmax.f32 %v1086_v11, %v1090_v18 }
 0x4aa   : > { %v1089_v23 = vmul.f32 0.01, %v1085_v21  ;;  %v1092_v26 = vmax.f32 %v1084_v15, %v1088_v20 }
 0x4ab   : > { %v1095_v25 = vmax.f32 %v1087_v19, %v1091_v22 }
 0x4ac   : > { %v1093_v27 = vmax.f32 %v1085_v21, %v1089_v23 }
 0x4ad   : > { %v1097_v28 = vpack.c.bf16 %v1095_v25, %v1094_v24 }
 0x4ae   : > { %v1096_v29 = vpack.c.bf16 %v1093_v27, %v1092_v26 }
 0x4b0   : > { %1520 = vmatprep.mubr.bf16.mxu1 %v1096_v29 }
 0x4b1   : > { %1521 = vmatmul.mubr.bf16.vlgmr.msra.gmra.mrb[8].mxu1 %v1097_v28 }
 0x584   : > { %v1522_v31 = vpop.f32.mrb[8].mxu1 }
 0x585   : > { %v1203_v32 = vpop.f32.mrb[9].mxu1  ;;  %v1212_v37 = vadd.f32 %v1522_v31, %v1354_v30 }
 0x586   : > { %v1204_v33 = vadd.f32 %v1354_v30, %v1203_v32  ;;  %v1523_v35 = vpop.f32.mrb[10].mxu1 }
 0x587   : > { %v1206_v34 = vpop.f32.mrb[11].mxu1  ;;  %v1215_v38 = vadd.f32 %v1523_v35, %v1354_v30  ;;  %1221 = vst.msk [vmem:[%s472_s26 + $0x10] sm:$0xff] %vm1218_vm1, %v1212_v37 }
 0x588   : > { %1219 = vst.msk [vmem:[%s472_s26] sm:$0xff] %vm1218_vm1, %v1204_v33  ;;  %v1207_v36 = vadd.f32 %v1354_v30, %v1206_v34 }
 0x589   : > { %1222 = vst.msk [vmem:[%s472_s26 + $0x18] sm:$0xff] %vm1218_vm1, %v1215_v38 }
 0x58a   : > { %1220 = vst.msk [vmem:[%s472_s26 + $0x8] sm:$0xff] %vm1218_vm1, %v1207_v36 }
 0x58b PF: > { %s25_s25 = sadd.s32 1, %s1666_s25  }
 0x58c   : > { %p22_p5 = scmp.ge.s32.totalorder %s25_s25, 4  }
 0x58e   :  { %24 = sbr.rel (!%p22_p5) target bundleno = 2 (0x2), region = 111 }
 0x595   :  { %1245 = vsyncpa [#allocation3], 1 }
 0x596   :  { %1247 = vsyncpa [#allocation3 + $0x1], 1 }
 0x597   :  { %1248 = vsyncpa [#allocation5], 1 }

</bundles_post_ra>
